<compile_context>
chip_gen: v5e
topology: v5e:2x2
jax: 0.10.0
libtpu: 0.0.40
codegen_flags: <defaults>
</compile_context>

<pallas_src>
import math

import jax
import jax.numpy as jnp
from jax.experimental import pallas as pl
from jax.experimental.pallas import tpu as pltpu


def _round_up(x, m):
    return (x + m - 1) // m * m


def _pick_vmem_limit_bytes():
    """Generation-aware scoped-VMEM limit (leave ~25% headroom)."""
    cap = 64 * 1024 * 1024            # safe fallback if detection fails
    try:
        cap = int(pltpu.get_tpu_info().vmem_capacity_bytes)
    except Exception:
        pass
    return max(32 * 1024 * 1024, min(int(cap * 3 // 4), 100 * 1024 * 1024))


# ---------------------------------------------------------------------------
# Fused kernel:
#   gcn = E + sum_{k=1..K} adj^k @ E        (MXU, adj resident in VMEM, bf16)
#   only the 2B gathered rows are accumulated (merged (2B, Ep) scratch)
#   pre  = sigmoid(sum(n_emb * d_emb, -1))  -> (1, B)
#   l2   = reg * mean_b(||n_b||^2 + ||d_b||^2)
# ---------------------------------------------------------------------------
def _make_fused_kernel(K, B, reg, Np, Ep):
    B2 = 2 * B

    def kernel(idx_ref,                      # scalar prefetch (SMEM) (2B,)
               adj_hbm, emb_hbm,             # HBM refs (memory_space=pl.ANY)
               pre_ref, l2_ref,              # VMEM outputs
               adj_vmem, x_ref, acc_ref, sem):   # VMEM scratch + DMA sems
        # Hoist scalar index reads before any DMA wait (sst->sld forwarding).
        ids = [idx_ref[b] for b in range(B2)]

        # ---- one-shot DMAs; grid=(1,) so no double-buffering is needed ----
        adj_cp = pltpu.make_async_copy(adj_hbm, adj_vmem, sem.at[0])
        emb_cp = pltpu.make_async_copy(emb_hbm, x_ref, sem.at[1])
        adj_cp.start()
        emb_cp.start()
        emb_cp.wait()

        # ---- k = 0 term: gather the 2B rows of E (overlaps the adj DMA) ----
        for b in range(B2):                  # static unroll; B is small
            acc_ref[pl.ds(b, 1), :] = x_ref[pl.ds(ids[b], 1), :]

        adj_cp.wait()
        adj = adj_vmem[...]                  # (Np, Np), bf16 by default

        # ---- K-step propagation; accumulate only the gathered rows ----
        for _ in range(K):                   # static unroll; K is small
            x_ref[...] = jnp.dot(adj, x_ref[...].astype(adj.dtype),
                                 preferred_element_type=jnp.float32)
            for b in range(B2):
                acc_ref[pl.ds(b, 1), :] += x_ref[pl.ds(ids[b], 1), :]

        # ---- scoring (element-wise + reductions stay f32) ----
        cat = acc_ref[...]                   # (2B, Ep) f32
        n_emb = cat[:B]                      # (B, Ep)
        d_emb = cat[B:]                      # (B, Ep)
        prod = n_emb * d_emb
        ones_e = jnp.ones((1, Ep), jnp.float32)
        dn = (((1,), (1,)), ((), ()))        # contract feature axis -> (1, B)
        s_row = jax.lax.dot_general(ones_e, prod, dn,
                                    preferred_element_type=jnp.float32)
        pre_ref[...] = jax.nn.sigmoid(s_row)                 # (1, B)
        # Note: at B=8 this is a masked store either way; pad B to 128 in the
        # wrapper only if B grows (see review note) — not worth it here.

        sq = jnp.sum(cat * cat, axis=-1, keepdims=True)      # (2B, 1)
        l2_ref[...] = (reg / B) * jnp.sum(sq, axis=0, keepdims=True)  # (1, 1)

    return kernel


def lrgcpnd_forward(adj_pad, emb_pad, idx, K, reg, vmem_limit_bytes):
    Np, Ep = emb_pad.shape
    B2 = idx.shape[0]
    B = B2 // 2
    adj_bytes = int(adj_pad.size) * jnp.dtype(adj_pad.dtype).itemsize

    cost = pl.CostEstimate(
        flops=int(2 * K * Np * Np * Ep + 6 * B * Ep),
        transcendentals=int(B),
        bytes_accessed=int(adj_bytes + Np * Ep * 4 + B2 * 4 + (B + 1) * 4))

    pre, l2 = pl.pallas_call(
        _make_fused_kernel(K, B, float(reg), Np, Ep),
        out_shape=(jax.ShapeDtypeStruct((1, B), jnp.float32),
                   jax.ShapeDtypeStruct((1, 1), jnp.float32)),
        grid_spec=pltpu.PrefetchScalarGridSpec(
            num_scalar_prefetch=1,                  # idx -> SMEM
            grid=(1,),
            in_specs=[pl.BlockSpec(memory_space=pl.ANY),   # adj (HBM, bf16)
                      pl.BlockSpec(memory_space=pl.ANY)],  # E   (HBM, f32)
            out_specs=(pl.BlockSpec((1, B), lambda i, idx_r: (0, 0)),
                       pl.BlockSpec((1, 1), lambda i, idx_r: (0, 0))),
            scratch_shapes=[pltpu.VMEM((Np, Np), adj_pad.dtype),   # adj (1x buf)
                            pltpu.VMEM((Np, Ep), jnp.float32),     # x_k state
                            pltpu.VMEM((B2, Ep), jnp.float32),     # gathered rows
                            pltpu.SemaphoreType.DMA((2,))]),
        compiler_params=pltpu.CompilerParams(
            dimension_semantics=("arbitrary",),
            vmem_limit_bytes=int(vmem_limit_bytes)),
        cost_estimate=cost,
    )(idx, adj_pad, emb_pad)
    return pre.reshape(B), l2.reshape(1)


# ---------------------------------------------------------------------------
# Module wrapper (parameter setup / padding / glue in plain JAX, jitted)
# ---------------------------------------------------------------------------
class LRGCPNDPallas:
    def __init__(self, n_num, d_num, adj, K, E_size, reg, key,
                 mxu_dtype=jnp.bfloat16):
        self.n_num = n_num
        self.d_num = d_num
        self.K = K
        self.reg = reg

        N = n_num + d_num
        Np = _round_up(N, 128)          # lane-align the contraction axis
        Ep = _round_up(E_size, 128)
        self.N, self.Np, self.Ep, self.E_size = N, Np, Ep, E_size
        # Note: Ep=128 uses half the 256-wide MXU on v6e/v7x; that is a model
        # size choice — do NOT pad a 128-wide embedding to 256 for it.

        stdv = 1.0 / math.sqrt(E_size)
        # nn.init.normal_(self.E.weight, std=stdv)
        self.E = (stdv * jax.random.normal(key, (N, E_size))).astype(jnp.float32)
        self.adj = adj.astype(jnp.float32)    # dense (N, N); torch.sparse.mm
                                              # materialized dense for the MXU

        adj_pad = jnp.zeros((Np, Np), jnp.float32).at[:N, :N].set(self.adj)
        self.adj_pad = adj_pad.astype(mxu_dtype)   # bf16 by default (MXU only)
        self.emb_pad = jnp.zeros((Np, Ep), jnp.float32).at[:N, :E_size].set(self.E)

        self._vmem_limit = _pick_vmem_limit_bytes()
        self._jitted = jax.jit(self._forward_impl)

    def _forward_impl(self, adj_pad, emb_pad, n, d_i):
        # Clamp indices: dynamic VMEM row reads have no runtime bounds check.
        n32 = jnp.clip(n.astype(jnp.int32), 0, self.n_num - 1)
        d32 = jnp.clip(d_i.astype(jnp.int32), 0, self.d_num - 1) + self.n_num
        idx = jnp.concatenate([n32, d32], axis=0)          # (2B,) int32
        return lrgcpnd_forward(adj_pad, emb_pad, idx,
                               self.K, self.reg, self._vmem_limit)

    def forward(self, n, d_i):
        return self._jitted(self.adj_pad, self.emb_pad, n, d_i)


# ---------------------------------------------------------------------------
# References
# ---------------------------------------------------------------------------
def reference_forward_exact(model, n, d_i):
    """Pure-f32 mirror of the PyTorch forward."""
    x = model.E
    gcn = model.E
    for _ in range(model.K):
        x = model.adj @ x
        gcn = gcn + x
    n_emb = gcn[n]
    d_emb = gcn[model.n_num + d_i]
    pre = jax.nn.sigmoid(jnp.sum(n_emb * d_emb, axis=-1))
    l2 = model.reg * jnp.mean(jnp.sum(n_emb ** 2 + d_emb ** 2, axis=-1))
    return pre, jnp.array([l2], dtype=jnp.float32)


def reference_forward_kernel_math(model, n, d_i):
    """Mirrors the kernel's (possibly bf16) MXU math with f32 accumulation."""
    adj_b = model.adj_pad                        # (Np, Np), bf16 by default
    x = model.emb_pad                            # (Np, Ep), f32
    gcn = x
    for _ in range(model.K):
        x = jnp.dot(adj_b, x.astype(adj_b.dtype),
                    preferred_element_type=jnp.float32)
        gcn = gcn + x
    n_emb = gcn[n]
    d_emb = gcn[model.n_num + d_i]
    pre = jax.nn.sigmoid(jnp.sum(n_emb * d_emb, axis=-1))
    l2 = model.reg * jnp.mean(jnp.sum(n_emb ** 2 + d_emb ** 2, axis=-1))
    return pre, jnp.array([l2], dtype=jnp.float32)


if __name__ == "__main__":
    key = jax.random.PRNGKey(0)
    k_adj, k_emb, k_n, k_d = jax.random.split(key, 4)

    # Small, deterministic problem sizes consistent with the module.
    n_num, d_num, E_size, K, B = 48, 16, 128, 3, 8
    reg = 1e-3
    N = n_num + d_num

    # Deterministic symmetric, row-normalized adjacency with self loops.
    a = (jax.random.uniform(k_adj, (N, N)) < 0.1).astype(jnp.float32)
    a = jnp.maximum(a, a.T) + jnp.eye(N, dtype=jnp.float32)
    adj = a / jnp.sum(a, axis=1, keepdims=True)

    model = LRGCPNDPallas(n_num, d_num, adj, K, E_size, reg, k_emb)

    n = jax.random.randint(k_n, (B,), 0, n_num, dtype=jnp.int32)
    d_i = jax.random.randint(k_d, (B,), 0, d_num, dtype=jnp.int32)

    pre_i, l2_loss = model.forward(n, d_i)
    jax.block_until_ready((pre_i, l2_loss))
    assert pre_i.shape == (B,) and l2_loss.shape == (1,)

    # Tight check vs the reference mirroring the kernel's bf16-MXU math.
    pre_k, l2_k = reference_forward_kernel_math(model, n, d_i)
    assert jnp.allclose(pre_i, pre_k, atol=1e-4, rtol=1e-3), (pre_i, pre_k)
    assert jnp.allclose(l2_loss, l2_k, atol=1e-5, rtol=1e-3), (l2_loss, l2_k)

    # Loose check vs the exact-f32 PyTorch-mirror (bf16 adj rounding only).
    pre_f, l2_f = reference_forward_exact(model, n, d_i)
    assert jnp.allclose(pre_i, pre_f, atol=1e-2, rtol=1e-2), (pre_i, pre_f)
    assert jnp.allclose(l2_loss, l2_f, atol=1e-4, rtol=3e-2), (l2_loss, l2_f)

    print("KERNEL_OK")
</pallas_src>

<mosaic_0001>
module attributes {stable_mosaic.version = 11 : i64} {
  func.func @kernel(%arg0: i32, %arg1: memref<16xi32, #tpu.memory_space<smem>>, %arg2: memref<128x128xbf16, #tpu.memory_space<any>>, %arg3: memref<128x128xf32, #tpu.memory_space<any>>, %arg4: memref<1x8xf32, #tpu.memory_space<vmem>>, %arg5: memref<1x1xf32, #tpu.memory_space<vmem>>, %arg6: memref<128x128xbf16, #tpu.memory_space<vmem>>, %arg7: memref<128x128xf32, #tpu.memory_space<vmem>>, %arg8: memref<16x128xf32, #tpu.memory_space<vmem>>, %arg9: memref<2x!tpu.dma_semaphore, #tpu.memory_space<semaphore_mem>>) attributes {dimension_semantics = [#tpu.dimension_semantics<arbitrary>], iteration_bounds = array<i64: 1>, scalar_prefetch = 1 : i64, scratch_operands = 4 : i64, tpu.core_type = #tpu.core_type<tc>, window_params = [{}, {}, {pipeline_mode = #tpu.pipeline_mode<synchronous>, transform_indices = @transform_2, window_bounds = array<i64: 1, 8>}, {pipeline_mode = #tpu.pipeline_mode<synchronous>, transform_indices = @transform_3, window_bounds = array<i64: 1, 1>}]} {
    %c0 = arith.constant 0 : index
    %0 = memref.load %arg1[%c0] : memref<16xi32, #tpu.memory_space<smem>>
    %c1 = arith.constant 1 : index
    %1 = memref.load %arg1[%c1] : memref<16xi32, #tpu.memory_space<smem>>
    %c2 = arith.constant 2 : index
    %2 = memref.load %arg1[%c2] : memref<16xi32, #tpu.memory_space<smem>>
    %c3 = arith.constant 3 : index
    %3 = memref.load %arg1[%c3] : memref<16xi32, #tpu.memory_space<smem>>
    %c4 = arith.constant 4 : index
    %4 = memref.load %arg1[%c4] : memref<16xi32, #tpu.memory_space<smem>>
    %c5 = arith.constant 5 : index
    %5 = memref.load %arg1[%c5] : memref<16xi32, #tpu.memory_space<smem>>
    %c6 = arith.constant 6 : index
    %6 = memref.load %arg1[%c6] : memref<16xi32, #tpu.memory_space<smem>>
    %c7 = arith.constant 7 : index
    %7 = memref.load %arg1[%c7] : memref<16xi32, #tpu.memory_space<smem>>
    %c8 = arith.constant 8 : index
    %8 = memref.load %arg1[%c8] : memref<16xi32, #tpu.memory_space<smem>>
    %c9 = arith.constant 9 : index
    %9 = memref.load %arg1[%c9] : memref<16xi32, #tpu.memory_space<smem>>
    %c10 = arith.constant 10 : index
    %10 = memref.load %arg1[%c10] : memref<16xi32, #tpu.memory_space<smem>>
    %c11 = arith.constant 11 : index
    %11 = memref.load %arg1[%c11] : memref<16xi32, #tpu.memory_space<smem>>
    %c12 = arith.constant 12 : index
    %12 = memref.load %arg1[%c12] : memref<16xi32, #tpu.memory_space<smem>>
    %c13 = arith.constant 13 : index
    %13 = memref.load %arg1[%c13] : memref<16xi32, #tpu.memory_space<smem>>
    %c14 = arith.constant 14 : index
    %14 = memref.load %arg1[%c14] : memref<16xi32, #tpu.memory_space<smem>>
    %c15 = arith.constant 15 : index
    %15 = memref.load %arg1[%c15] : memref<16xi32, #tpu.memory_space<smem>>
    %c0_i32 = arith.constant 0 : i32
    %16 = tpu.memref_slice %arg9[%c0_i32] : memref<2x!tpu.dma_semaphore, #tpu.memory_space<semaphore_mem>> -> memref<1x!tpu.dma_semaphore, #tpu.memory_space<semaphore_mem>>
    %17 = tpu.memref_squeeze %16 : memref<1x!tpu.dma_semaphore, #tpu.memory_space<semaphore_mem>> -> memref<!tpu.dma_semaphore, #tpu.memory_space<semaphore_mem>>
    tpu.enqueue_dma source(%arg2 : memref<128x128xbf16, #tpu.memory_space<any>>) target(%arg6 : memref<128x128xbf16, #tpu.memory_space<vmem>>) target_semaphore(%17 : memref<!tpu.dma_semaphore, #tpu.memory_space<semaphore_mem>>)
    %c1_i32 = arith.constant 1 : i32
    %18 = tpu.memref_slice %arg9[%c1_i32] : memref<2x!tpu.dma_semaphore, #tpu.memory_space<semaphore_mem>> -> memref<1x!tpu.dma_semaphore, #tpu.memory_space<semaphore_mem>>
    %19 = tpu.memref_squeeze %18 : memref<1x!tpu.dma_semaphore, #tpu.memory_space<semaphore_mem>> -> memref<!tpu.dma_semaphore, #tpu.memory_space<semaphore_mem>>
    tpu.enqueue_dma source(%arg3 : memref<128x128xf32, #tpu.memory_space<any>>) target(%arg7 : memref<128x128xf32, #tpu.memory_space<vmem>>) target_semaphore(%19 : memref<!tpu.dma_semaphore, #tpu.memory_space<semaphore_mem>>)
    %c1_i32_0 = arith.constant 1 : i32
    %20 = tpu.memref_slice %arg9[%c1_i32_0] : memref<2x!tpu.dma_semaphore, #tpu.memory_space<semaphore_mem>> -> memref<1x!tpu.dma_semaphore, #tpu.memory_space<semaphore_mem>>
    %21 = tpu.memref_squeeze %20 : memref<1x!tpu.dma_semaphore, #tpu.memory_space<semaphore_mem>> -> memref<!tpu.dma_semaphore, #tpu.memory_space<semaphore_mem>>
    tpu.wait_dma2 semaphore(%21 : memref<!tpu.dma_semaphore, #tpu.memory_space<semaphore_mem>>) src(%arg3 : memref<128x128xf32, #tpu.memory_space<any>>) dst(%arg7 : memref<128x128xf32, #tpu.memory_space<vmem>>)
    %22 = arith.index_cast %0 : i32 to index
    %c0_1 = arith.constant 0 : index
    %23 = vector.load %arg7[%22, %c0_1] : memref<128x128xf32, #tpu.memory_space<vmem>>, vector<1x128xf32>
    %c0_2 = arith.constant 0 : index
    %c0_3 = arith.constant 0 : index
    %24 = vector.load %arg8[%c0_2, %c0_3] : memref<16x128xf32, #tpu.memory_space<vmem>>, vector<1x128xf32>
    tpu.vector_store %arg8[%c0_2, %c0_3], %23 {strides = array<i32>} : memref<16x128xf32, #tpu.memory_space<vmem>>, vector<1x128xf32>,
    %25 = arith.index_cast %1 : i32 to index
    %c0_4 = arith.constant 0 : index
    %26 = vector.load %arg7[%25, %c0_4] : memref<128x128xf32, #tpu.memory_space<vmem>>, vector<1x128xf32>
    %c1_5 = arith.constant 1 : index
    %c0_6 = arith.constant 0 : index
    %27 = vector.load %arg8[%c1_5, %c0_6] : memref<16x128xf32, #tpu.memory_space<vmem>>, vector<1x128xf32>
    tpu.vector_store %arg8[%c1_5, %c0_6], %26 {strides = array<i32>} : memref<16x128xf32, #tpu.memory_space<vmem>>, vector<1x128xf32>,
    %28 = arith.index_cast %2 : i32 to index
    %c0_7 = arith.constant 0 : index
    %29 = vector.load %arg7[%28, %c0_7] : memref<128x128xf32, #tpu.memory_space<vmem>>, vector<1x128xf32>
    %c2_8 = arith.constant 2 : index
    %c0_9 = arith.constant 0 : index
    %30 = vector.load %arg8[%c2_8, %c0_9] : memref<16x128xf32, #tpu.memory_space<vmem>>, vector<1x128xf32>
    tpu.vector_store %arg8[%c2_8, %c0_9], %29 {strides = array<i32>} : memref<16x128xf32, #tpu.memory_space<vmem>>, vector<1x128xf32>,
    %31 = arith.index_cast %3 : i32 to index
    %c0_10 = arith.constant 0 : index
    %32 = vector.load %arg7[%31, %c0_10] : memref<128x128xf32, #tpu.memory_space<vmem>>, vector<1x128xf32>
    %c3_11 = arith.constant 3 : index
    %c0_12 = arith.constant 0 : index
    %33 = vector.load %arg8[%c3_11, %c0_12] : memref<16x128xf32, #tpu.memory_space<vmem>>, vector<1x128xf32>
    tpu.vector_store %arg8[%c3_11, %c0_12], %32 {strides = array<i32>} : memref<16x128xf32, #tpu.memory_space<vmem>>, vector<1x128xf32>,
    %34 = arith.index_cast %4 : i32 to index
    %c0_13 = arith.constant 0 : index
    %35 = vector.load %arg7[%34, %c0_13] : memref<128x128xf32, #tpu.memory_space<vmem>>, vector<1x128xf32>
    %c4_14 = arith.constant 4 : index
    %c0_15 = arith.constant 0 : index
    %36 = vector.load %arg8[%c4_14, %c0_15] : memref<16x128xf32, #tpu.memory_space<vmem>>, vector<1x128xf32>
    tpu.vector_store %arg8[%c4_14, %c0_15], %35 {strides = array<i32>} : memref<16x128xf32, #tpu.memory_space<vmem>>, vector<1x128xf32>,
    %37 = arith.index_cast %5 : i32 to index
    %c0_16 = arith.constant 0 : index
    %38 = vector.load %arg7[%37, %c0_16] : memref<128x128xf32, #tpu.memory_space<vmem>>, vector<1x128xf32>
    %c5_17 = arith.constant 5 : index
    %c0_18 = arith.constant 0 : index
    %39 = vector.load %arg8[%c5_17, %c0_18] : memref<16x128xf32, #tpu.memory_space<vmem>>, vector<1x128xf32>
    tpu.vector_store %arg8[%c5_17, %c0_18], %38 {strides = array<i32>} : memref<16x128xf32, #tpu.memory_space<vmem>>, vector<1x128xf32>,
    %40 = arith.index_cast %6 : i32 to index
    %c0_19 = arith.constant 0 : index
    %41 = vector.load %arg7[%40, %c0_19] : memref<128x128xf32, #tpu.memory_space<vmem>>, vector<1x128xf32>
    %c6_20 = arith.constant 6 : index
    %c0_21 = arith.constant 0 : index
    %42 = vector.load %arg8[%c6_20, %c0_21] : memref<16x128xf32, #tpu.memory_space<vmem>>, vector<1x128xf32>
    tpu.vector_store %arg8[%c6_20, %c0_21], %41 {strides = array<i32>} : memref<16x128xf32, #tpu.memory_space<vmem>>, vector<1x128xf32>,
    %43 = arith.index_cast %7 : i32 to index
    %c0_22 = arith.constant 0 : index
    %44 = vector.load %arg7[%43, %c0_22] : memref<128x128xf32, #tpu.memory_space<vmem>>, vector<1x128xf32>
    %c7_23 = arith.constant 7 : index
    %c0_24 = arith.constant 0 : index
    %45 = vector.load %arg8[%c7_23, %c0_24] : memref<16x128xf32, #tpu.memory_space<vmem>>, vector<1x128xf32>
    tpu.vector_store %arg8[%c7_23, %c0_24], %44 {strides = array<i32>} : memref<16x128xf32, #tpu.memory_space<vmem>>, vector<1x128xf32>,
    %46 = arith.index_cast %8 : i32 to index
    %c0_25 = arith.constant 0 : index
    %47 = vector.load %arg7[%46, %c0_25] : memref<128x128xf32, #tpu.memory_space<vmem>>, vector<1x128xf32>
    %c8_26 = arith.constant 8 : index
    %c0_27 = arith.constant 0 : index
    %48 = vector.load %arg8[%c8_26, %c0_27] : memref<16x128xf32, #tpu.memory_space<vmem>>, vector<1x128xf32>
    tpu.vector_store %arg8[%c8_26, %c0_27], %47 {strides = array<i32>} : memref<16x128xf32, #tpu.memory_space<vmem>>, vector<1x128xf32>,
    %49 = arith.index_cast %9 : i32 to index
    %c0_28 = arith.constant 0 : index
    %50 = vector.load %arg7[%49, %c0_28] : memref<128x128xf32, #tpu.memory_space<vmem>>, vector<1x128xf32>
    %c9_29 = arith.constant 9 : index
    %c0_30 = arith.constant 0 : index
    %51 = vector.load %arg8[%c9_29, %c0_30] : memref<16x128xf32, #tpu.memory_space<vmem>>, vector<1x128xf32>
    tpu.vector_store %arg8[%c9_29, %c0_30], %50 {strides = array<i32>} : memref<16x128xf32, #tpu.memory_space<vmem>>, vector<1x128xf32>,
    %52 = arith.index_cast %10 : i32 to index
    %c0_31 = arith.constant 0 : index
    %53 = vector.load %arg7[%52, %c0_31] : memref<128x128xf32, #tpu.memory_space<vmem>>, vector<1x128xf32>
    %c10_32 = arith.constant 10 : index
    %c0_33 = arith.constant 0 : index
    %54 = vector.load %arg8[%c10_32, %c0_33] : memref<16x128xf32, #tpu.memory_space<vmem>>, vector<1x128xf32>
    tpu.vector_store %arg8[%c10_32, %c0_33], %53 {strides = array<i32>} : memref<16x128xf32, #tpu.memory_space<vmem>>, vector<1x128xf32>,
    %55 = arith.index_cast %11 : i32 to index
    %c0_34 = arith.constant 0 : index
    %56 = vector.load %arg7[%55, %c0_34] : memref<128x128xf32, #tpu.memory_space<vmem>>, vector<1x128xf32>
    %c11_35 = arith.constant 11 : index
    %c0_36 = arith.constant 0 : index
    %57 = vector.load %arg8[%c11_35, %c0_36] : memref<16x128xf32, #tpu.memory_space<vmem>>, vector<1x128xf32>
    tpu.vector_store %arg8[%c11_35, %c0_36], %56 {strides = array<i32>} : memref<16x128xf32, #tpu.memory_space<vmem>>, vector<1x128xf32>,
    %58 = arith.index_cast %12 : i32 to index
    %c0_37 = arith.constant 0 : index
    %59 = vector.load %arg7[%58, %c0_37] : memref<128x128xf32, #tpu.memory_space<vmem>>, vector<1x128xf32>
    %c12_38 = arith.constant 12 : index
    %c0_39 = arith.constant 0 : index
    %60 = vector.load %arg8[%c12_38, %c0_39] : memref<16x128xf32, #tpu.memory_space<vmem>>, vector<1x128xf32>
    tpu.vector_store %arg8[%c12_38, %c0_39], %59 {strides = array<i32>} : memref<16x128xf32, #tpu.memory_space<vmem>>, vector<1x128xf32>,
    %61 = arith.index_cast %13 : i32 to index
    %c0_40 = arith.constant 0 : index
    %62 = vector.load %arg7[%61, %c0_40] : memref<128x128xf32, #tpu.memory_space<vmem>>, vector<1x128xf32>
    %c13_41 = arith.constant 13 : index
    %c0_42 = arith.constant 0 : index
    %63 = vector.load %arg8[%c13_41, %c0_42] : memref<16x128xf32, #tpu.memory_space<vmem>>, vector<1x128xf32>
    tpu.vector_store %arg8[%c13_41, %c0_42], %62 {strides = array<i32>} : memref<16x128xf32, #tpu.memory_space<vmem>>, vector<1x128xf32>,
    %64 = arith.index_cast %14 : i32 to index
    %c0_43 = arith.constant 0 : index
    %65 = vector.load %arg7[%64, %c0_43] : memref<128x128xf32, #tpu.memory_space<vmem>>, vector<1x128xf32>
    %c14_44 = arith.constant 14 : index
    %c0_45 = arith.constant 0 : index
    %66 = vector.load %arg8[%c14_44, %c0_45] : memref<16x128xf32, #tpu.memory_space<vmem>>, vector<1x128xf32>
    tpu.vector_store %arg8[%c14_44, %c0_45], %65 {strides = array<i32>} : memref<16x128xf32, #tpu.memory_space<vmem>>, vector<1x128xf32>,
    %67 = arith.index_cast %15 : i32 to index
    %c0_46 = arith.constant 0 : index
    %68 = vector.load %arg7[%67, %c0_46] : memref<128x128xf32, #tpu.memory_space<vmem>>, vector<1x128xf32>
    %c15_47 = arith.constant 15 : index
    %c0_48 = arith.constant 0 : index
    %69 = vector.load %arg8[%c15_47, %c0_48] : memref<16x128xf32, #tpu.memory_space<vmem>>, vector<1x128xf32>
    tpu.vector_store %arg8[%c15_47, %c0_48], %68 {strides = array<i32>} : memref<16x128xf32, #tpu.memory_space<vmem>>, vector<1x128xf32>,
    %c0_i32_49 = arith.constant 0 : i32
    %70 = tpu.memref_slice %arg9[%c0_i32_49] : memref<2x!tpu.dma_semaphore, #tpu.memory_space<semaphore_mem>> -> memref<1x!tpu.dma_semaphore, #tpu.memory_space<semaphore_mem>>
    %71 = tpu.memref_squeeze %70 : memref<1x!tpu.dma_semaphore, #tpu.memory_space<semaphore_mem>> -> memref<!tpu.dma_semaphore, #tpu.memory_space<semaphore_mem>>
    tpu.wait_dma2 semaphore(%71 : memref<!tpu.dma_semaphore, #tpu.memory_space<semaphore_mem>>) src(%arg2 : memref<128x128xbf16, #tpu.memory_space<any>>) dst(%arg6 : memref<128x128xbf16, #tpu.memory_space<vmem>>)
    %c0_50 = arith.constant 0 : index
    %c0_51 = arith.constant 0 : index
    %72 = vector.load %arg6[%c0_50, %c0_51] : memref<128x128xbf16, #tpu.memory_space<vmem>>, vector<128x128xbf16>
    %c0_52 = arith.constant 0 : index
    %c0_53 = arith.constant 0 : index
    %73 = vector.load %arg7[%c0_52, %c0_53] : memref<128x128xf32, #tpu.memory_space<vmem>>, vector<128x128xf32>
    %74 = arith.truncf %73 : vector<128x128xf32> to vector<128x128xbf16>
    %cst = arith.constant dense<0.000000e+00> : vector<128x128xf32>
    %75 = tpu.matmul %72, %74, %cst {dimension_numbers = #tpu.dot_dimension_numbers<[1], [0], [0], [1], [0, 0, 1, 1], [], []>} : vector<128x128xbf16>, vector<128x128xbf16>, vector<128x128xf32> -> vector<128x128xf32>
    %c0_54 = arith.constant 0 : index
    %c0_55 = arith.constant 0 : index
    %76 = vector.load %arg7[%c0_54, %c0_55] : memref<128x128xf32, #tpu.memory_space<vmem>>, vector<128x128xf32>
    tpu.vector_store %arg7[%c0_54, %c0_55], %75 {strides = array<i32>} : memref<128x128xf32, #tpu.memory_space<vmem>>, vector<128x128xf32>,
    %c0_56 = arith.constant 0 : index
    %c0_57 = arith.constant 0 : index
    %77 = vector.load %arg8[%c0_56, %c0_57] : memref<16x128xf32, #tpu.memory_space<vmem>>, vector<1x128xf32>
    %78 = arith.index_cast %0 : i32 to index
    %c0_58 = arith.constant 0 : index
    %79 = vector.load %arg7[%78, %c0_58] : memref<128x128xf32, #tpu.memory_space<vmem>>, vector<1x128xf32>
    %80 = arith.addf %77, %79 : vector<1x128xf32>
    %c0_59 = arith.constant 0 : index
    %c0_60 = arith.constant 0 : index
    %81 = vector.load %arg8[%c0_59, %c0_60] : memref<16x128xf32, #tpu.memory_space<vmem>>, vector<1x128xf32>
    tpu.vector_store %arg8[%c0_59, %c0_60], %80 {strides = array<i32>} : memref<16x128xf32, #tpu.memory_space<vmem>>, vector<1x128xf32>,
    %c1_61 = arith.constant 1 : index
    %c0_62 = arith.constant 0 : index
    %82 = vector.load %arg8[%c1_61, %c0_62] : memref<16x128xf32, #tpu.memory_space<vmem>>, vector<1x128xf32>
    %83 = arith.index_cast %1 : i32 to index
    %c0_63 = arith.constant 0 : index
    %84 = vector.load %arg7[%83, %c0_63] : memref<128x128xf32, #tpu.memory_space<vmem>>, vector<1x128xf32>
    %85 = arith.addf %82, %84 : vector<1x128xf32>
    %c1_64 = arith.constant 1 : index
    %c0_65 = arith.constant 0 : index
    %86 = vector.load %arg8[%c1_64, %c0_65] : memref<16x128xf32, #tpu.memory_space<vmem>>, vector<1x128xf32>
    tpu.vector_store %arg8[%c1_64, %c0_65], %85 {strides = array<i32>} : memref<16x128xf32, #tpu.memory_space<vmem>>, vector<1x128xf32>,
    %c2_66 = arith.constant 2 : index
    %c0_67 = arith.constant 0 : index
    %87 = vector.load %arg8[%c2_66, %c0_67] : memref<16x128xf32, #tpu.memory_space<vmem>>, vector<1x128xf32>
    %88 = arith.index_cast %2 : i32 to index
    %c0_68 = arith.constant 0 : index
    %89 = vector.load %arg7[%88, %c0_68] : memref<128x128xf32, #tpu.memory_space<vmem>>, vector<1x128xf32>
    %90 = arith.addf %87, %89 : vector<1x128xf32>
    %c2_69 = arith.constant 2 : index
    %c0_70 = arith.constant 0 : index
    %91 = vector.load %arg8[%c2_69, %c0_70] : memref<16x128xf32, #tpu.memory_space<vmem>>, vector<1x128xf32>
    tpu.vector_store %arg8[%c2_69, %c0_70], %90 {strides = array<i32>} : memref<16x128xf32, #tpu.memory_space<vmem>>, vector<1x128xf32>,
    %c3_71 = arith.constant 3 : index
    %c0_72 = arith.constant 0 : index
    %92 = vector.load %arg8[%c3_71, %c0_72] : memref<16x128xf32, #tpu.memory_space<vmem>>, vector<1x128xf32>
    %93 = arith.index_cast %3 : i32 to index
    %c0_73 = arith.constant 0 : index
    %94 = vector.load %arg7[%93, %c0_73] : memref<128x128xf32, #tpu.memory_space<vmem>>, vector<1x128xf32>
    %95 = arith.addf %92, %94 : vector<1x128xf32>
    %c3_74 = arith.constant 3 : index
    %c0_75 = arith.constant 0 : index
    %96 = vector.load %arg8[%c3_74, %c0_75] : memref<16x128xf32, #tpu.memory_space<vmem>>, vector<1x128xf32>
    tpu.vector_store %arg8[%c3_74, %c0_75], %95 {strides = array<i32>} : memref<16x128xf32, #tpu.memory_space<vmem>>, vector<1x128xf32>,
    %c4_76 = arith.constant 4 : index
    %c0_77 = arith.constant 0 : index
    %97 = vector.load %arg8[%c4_76, %c0_77] : memref<16x128xf32, #tpu.memory_space<vmem>>, vector<1x128xf32>
    %98 = arith.index_cast %4 : i32 to index
    %c0_78 = arith.constant 0 : index
    %99 = vector.load %arg7[%98, %c0_78] : memref<128x128xf32, #tpu.memory_space<vmem>>, vector<1x128xf32>
    %100 = arith.addf %97, %99 : vector<1x128xf32>
    %c4_79 = arith.constant 4 : index
    %c0_80 = arith.constant 0 : index
    %101 = vector.load %arg8[%c4_79, %c0_80] : memref<16x128xf32, #tpu.memory_space<vmem>>, vector<1x128xf32>
    tpu.vector_store %arg8[%c4_79, %c0_80], %100 {strides = array<i32>} : memref<16x128xf32, #tpu.memory_space<vmem>>, vector<1x128xf32>,
    %c5_81 = arith.constant 5 : index
    %c0_82 = arith.constant 0 : index
    %102 = vector.load %arg8[%c5_81, %c0_82] : memref<16x128xf32, #tpu.memory_space<vmem>>, vector<1x128xf32>
    %103 = arith.index_cast %5 : i32 to index
    %c0_83 = arith.constant 0 : index
    %104 = vector.load %arg7[%103, %c0_83] : memref<128x128xf32, #tpu.memory_space<vmem>>, vector<1x128xf32>
    %105 = arith.addf %102, %104 : vector<1x128xf32>
    %c5_84 = arith.constant 5 : index
    %c0_85 = arith.constant 0 : index
    %106 = vector.load %arg8[%c5_84, %c0_85] : memref<16x128xf32, #tpu.memory_space<vmem>>, vector<1x128xf32>
    tpu.vector_store %arg8[%c5_84, %c0_85], %105 {strides = array<i32>} : memref<16x128xf32, #tpu.memory_space<vmem>>, vector<1x128xf32>,
    %c6_86 = arith.constant 6 : index
    %c0_87 = arith.constant 0 : index
    %107 = vector.load %arg8[%c6_86, %c0_87] : memref<16x128xf32, #tpu.memory_space<vmem>>, vector<1x128xf32>
    %108 = arith.index_cast %6 : i32 to index
    %c0_88 = arith.constant 0 : index
    %109 = vector.load %arg7[%108, %c0_88] : memref<128x128xf32, #tpu.memory_space<vmem>>, vector<1x128xf32>
    %110 = arith.addf %107, %109 : vector<1x128xf32>
    %c6_89 = arith.constant 6 : index
    %c0_90 = arith.constant 0 : index
    %111 = vector.load %arg8[%c6_89, %c0_90] : memref<16x128xf32, #tpu.memory_space<vmem>>, vector<1x128xf32>
    tpu.vector_store %arg8[%c6_89, %c0_90], %110 {strides = array<i32>} : memref<16x128xf32, #tpu.memory_space<vmem>>, vector<1x128xf32>,
    %c7_91 = arith.constant 7 : index
    %c0_92 = arith.constant 0 : index
    %112 = vector.load %arg8[%c7_91, %c0_92] : memref<16x128xf32, #tpu.memory_space<vmem>>, vector<1x128xf32>
    %113 = arith.index_cast %7 : i32 to index
    %c0_93 = arith.constant 0 : index
    %114 = vector.load %arg7[%113, %c0_93] : memref<128x128xf32, #tpu.memory_space<vmem>>, vector<1x128xf32>
    %115 = arith.addf %112, %114 : vector<1x128xf32>
    %c7_94 = arith.constant 7 : index
    %c0_95 = arith.constant 0 : index
    %116 = vector.load %arg8[%c7_94, %c0_95] : memref<16x128xf32, #tpu.memory_space<vmem>>, vector<1x128xf32>
    tpu.vector_store %arg8[%c7_94, %c0_95], %115 {strides = array<i32>} : memref<16x128xf32, #tpu.memory_space<vmem>>, vector<1x128xf32>,
    %c8_96 = arith.constant 8 : index
    %c0_97 = arith.constant 0 : index
    %117 = vector.load %arg8[%c8_96, %c0_97] : memref<16x128xf32, #tpu.memory_space<vmem>>, vector<1x128xf32>
    %118 = arith.index_cast %8 : i32 to index
    %c0_98 = arith.constant 0 : index
    %119 = vector.load %arg7[%118, %c0_98] : memref<128x128xf32, #tpu.memory_space<vmem>>, vector<1x128xf32>
    %120 = arith.addf %117, %119 : vector<1x128xf32>
    %c8_99 = arith.constant 8 : index
    %c0_100 = arith.constant 0 : index
    %121 = vector.load %arg8[%c8_99, %c0_100] : memref<16x128xf32, #tpu.memory_space<vmem>>, vector<1x128xf32>
    tpu.vector_store %arg8[%c8_99, %c0_100], %120 {strides = array<i32>} : memref<16x128xf32, #tpu.memory_space<vmem>>, vector<1x128xf32>,
    %c9_101 = arith.constant 9 : index
    %c0_102 = arith.constant 0 : index
    %122 = vector.load %arg8[%c9_101, %c0_102] : memref<16x128xf32, #tpu.memory_space<vmem>>, vector<1x128xf32>
    %123 = arith.index_cast %9 : i32 to index
    %c0_103 = arith.constant 0 : index
    %124 = vector.load %arg7[%123, %c0_103] : memref<128x128xf32, #tpu.memory_space<vmem>>, vector<1x128xf32>
    %125 = arith.addf %122, %124 : vector<1x128xf32>
    %c9_104 = arith.constant 9 : index
    %c0_105 = arith.constant 0 : index
    %126 = vector.load %arg8[%c9_104, %c0_105] : memref<16x128xf32, #tpu.memory_space<vmem>>, vector<1x128xf32>
    tpu.vector_store %arg8[%c9_104, %c0_105], %125 {strides = array<i32>} : memref<16x128xf32, #tpu.memory_space<vmem>>, vector<1x128xf32>,
    %c10_106 = arith.constant 10 : index
    %c0_107 = arith.constant 0 : index
    %127 = vector.load %arg8[%c10_106, %c0_107] : memref<16x128xf32, #tpu.memory_space<vmem>>, vector<1x128xf32>
    %128 = arith.index_cast %10 : i32 to index
    %c0_108 = arith.constant 0 : index
    %129 = vector.load %arg7[%128, %c0_108] : memref<128x128xf32, #tpu.memory_space<vmem>>, vector<1x128xf32>
    %130 = arith.addf %127, %129 : vector<1x128xf32>
    %c10_109 = arith.constant 10 : index
    %c0_110 = arith.constant 0 : index
    %131 = vector.load %arg8[%c10_109, %c0_110] : memref<16x128xf32, #tpu.memory_space<vmem>>, vector<1x128xf32>
    tpu.vector_store %arg8[%c10_109, %c0_110], %130 {strides = array<i32>} : memref<16x128xf32, #tpu.memory_space<vmem>>, vector<1x128xf32>,
    %c11_111 = arith.constant 11 : index
    %c0_112 = arith.constant 0 : index
    %132 = vector.load %arg8[%c11_111, %c0_112] : memref<16x128xf32, #tpu.memory_space<vmem>>, vector<1x128xf32>
    %133 = arith.index_cast %11 : i32 to index
    %c0_113 = arith.constant 0 : index
    %134 = vector.load %arg7[%133, %c0_113] : memref<128x128xf32, #tpu.memory_space<vmem>>, vector<1x128xf32>
    %135 = arith.addf %132, %134 : vector<1x128xf32>
    %c11_114 = arith.constant 11 : index
    %c0_115 = arith.constant 0 : index
    %136 = vector.load %arg8[%c11_114, %c0_115] : memref<16x128xf32, #tpu.memory_space<vmem>>, vector<1x128xf32>
    tpu.vector_store %arg8[%c11_114, %c0_115], %135 {strides = array<i32>} : memref<16x128xf32, #tpu.memory_space<vmem>>, vector<1x128xf32>,
    %c12_116 = arith.constant 12 : index
    %c0_117 = arith.constant 0 : index
    %137 = vector.load %arg8[%c12_116, %c0_117] : memref<16x128xf32, #tpu.memory_space<vmem>>, vector<1x128xf32>
    %138 = arith.index_cast %12 : i32 to index
    %c0_118 = arith.constant 0 : index
    %139 = vector.load %arg7[%138, %c0_118] : memref<128x128xf32, #tpu.memory_space<vmem>>, vector<1x128xf32>
    %140 = arith.addf %137, %139 : vector<1x128xf32>
    %c12_119 = arith.constant 12 : index
    %c0_120 = arith.constant 0 : index
    %141 = vector.load %arg8[%c12_119, %c0_120] : memref<16x128xf32, #tpu.memory_space<vmem>>, vector<1x128xf32>
    tpu.vector_store %arg8[%c12_119, %c0_120], %140 {strides = array<i32>} : memref<16x128xf32, #tpu.memory_space<vmem>>, vector<1x128xf32>,
    %c13_121 = arith.constant 13 : index
    %c0_122 = arith.constant 0 : index
    %142 = vector.load %arg8[%c13_121, %c0_122] : memref<16x128xf32, #tpu.memory_space<vmem>>, vector<1x128xf32>
    %143 = arith.index_cast %13 : i32 to index
    %c0_123 = arith.constant 0 : index
    %144 = vector.load %arg7[%143, %c0_123] : memref<128x128xf32, #tpu.memory_space<vmem>>, vector<1x128xf32>
    %145 = arith.addf %142, %144 : vector<1x128xf32>
    %c13_124 = arith.constant 13 : index
    %c0_125 = arith.constant 0 : index
    %146 = vector.load %arg8[%c13_124, %c0_125] : memref<16x128xf32, #tpu.memory_space<vmem>>, vector<1x128xf32>
    tpu.vector_store %arg8[%c13_124, %c0_125], %145 {strides = array<i32>} : memref<16x128xf32, #tpu.memory_space<vmem>>, vector<1x128xf32>,
    %c14_126 = arith.constant 14 : index
    %c0_127 = arith.constant 0 : index
    %147 = vector.load %arg8[%c14_126, %c0_127] : memref<16x128xf32, #tpu.memory_space<vmem>>, vector<1x128xf32>
    %148 = arith.index_cast %14 : i32 to index
    %c0_128 = arith.constant 0 : index
    %149 = vector.load %arg7[%148, %c0_128] : memref<128x128xf32, #tpu.memory_space<vmem>>, vector<1x128xf32>
    %150 = arith.addf %147, %149 : vector<1x128xf32>
    %c14_129 = arith.constant 14 : index
    %c0_130 = arith.constant 0 : index
    %151 = vector.load %arg8[%c14_129, %c0_130] : memref<16x128xf32, #tpu.memory_space<vmem>>, vector<1x128xf32>
    tpu.vector_store %arg8[%c14_129, %c0_130], %150 {strides = array<i32>} : memref<16x128xf32, #tpu.memory_space<vmem>>, vector<1x128xf32>,
    %c15_131 = arith.constant 15 : index
    %c0_132 = arith.constant 0 : index
    %152 = vector.load %arg8[%c15_131, %c0_132] : memref<16x128xf32, #tpu.memory_space<vmem>>, vector<1x128xf32>
    %153 = arith.index_cast %15 : i32 to index
    %c0_133 = arith.constant 0 : index
    %154 = vector.load %arg7[%153, %c0_133] : memref<128x128xf32, #tpu.memory_space<vmem>>, vector<1x128xf32>
    %155 = arith.addf %152, %154 : vector<1x128xf32>
    %c15_134 = arith.constant 15 : index
    %c0_135 = arith.constant 0 : index
    %156 = vector.load %arg8[%c15_134, %c0_135] : memref<16x128xf32, #tpu.memory_space<vmem>>, vector<1x128xf32>
    tpu.vector_store %arg8[%c15_134, %c0_135], %155 {strides = array<i32>} : memref<16x128xf32, #tpu.memory_space<vmem>>, vector<1x128xf32>,
    %c0_136 = arith.constant 0 : index
    %c0_137 = arith.constant 0 : index
    %157 = vector.load %arg7[%c0_136, %c0_137] : memref<128x128xf32, #tpu.memory_space<vmem>>, vector<128x128xf32>
    %158 = arith.truncf %157 : vector<128x128xf32> to vector<128x128xbf16>
    %cst_138 = arith.constant dense<0.000000e+00> : vector<128x128xf32>
    %159 = tpu.matmul %72, %158, %cst_138 {dimension_numbers = #tpu.dot_dimension_numbers<[1], [0], [0], [1], [0, 0, 1, 1], [], []>} : vector<128x128xbf16>, vector<128x128xbf16>, vector<128x128xf32> -> vector<128x128xf32>
    %c0_139 = arith.constant 0 : index
    %c0_140 = arith.constant 0 : index
    %160 = vector.load %arg7[%c0_139, %c0_140] : memref<128x128xf32, #tpu.memory_space<vmem>>, vector<128x128xf32>
    tpu.vector_store %arg7[%c0_139, %c0_140], %159 {strides = array<i32>} : memref<128x128xf32, #tpu.memory_space<vmem>>, vector<128x128xf32>,
    %c0_141 = arith.constant 0 : index
    %c0_142 = arith.constant 0 : index
    %161 = vector.load %arg8[%c0_141, %c0_142] : memref<16x128xf32, #tpu.memory_space<vmem>>, vector<1x128xf32>
    %162 = arith.index_cast %0 : i32 to index
    %c0_143 = arith.constant 0 : index
    %163 = vector.load %arg7[%162, %c0_143] : memref<128x128xf32, #tpu.memory_space<vmem>>, vector<1x128xf32>
    %164 = arith.addf %161, %163 : vector<1x128xf32>
    %c0_144 = arith.constant 0 : index
    %c0_145 = arith.constant 0 : index
    %165 = vector.load %arg8[%c0_144, %c0_145] : memref<16x128xf32, #tpu.memory_space<vmem>>, vector<1x128xf32>
    tpu.vector_store %arg8[%c0_144, %c0_145], %164 {strides = array<i32>} : memref<16x128xf32, #tpu.memory_space<vmem>>, vector<1x128xf32>,
    %c1_146 = arith.constant 1 : index
    %c0_147 = arith.constant 0 : index
    %166 = vector.load %arg8[%c1_146, %c0_147] : memref<16x128xf32, #tpu.memory_space<vmem>>, vector<1x128xf32>
    %167 = arith.index_cast %1 : i32 to index
    %c0_148 = arith.constant 0 : index
    %168 = vector.load %arg7[%167, %c0_148] : memref<128x128xf32, #tpu.memory_space<vmem>>, vector<1x128xf32>
    %169 = arith.addf %166, %168 : vector<1x128xf32>
    %c1_149 = arith.constant 1 : index
    %c0_150 = arith.constant 0 : index
    %170 = vector.load %arg8[%c1_149, %c0_150] : memref<16x128xf32, #tpu.memory_space<vmem>>, vector<1x128xf32>
    tpu.vector_store %arg8[%c1_149, %c0_150], %169 {strides = array<i32>} : memref<16x128xf32, #tpu.memory_space<vmem>>, vector<1x128xf32>,
    %c2_151 = arith.constant 2 : index
    %c0_152 = arith.constant 0 : index
    %171 = vector.load %arg8[%c2_151, %c0_152] : memref<16x128xf32, #tpu.memory_space<vmem>>, vector<1x128xf32>
    %172 = arith.index_cast %2 : i32 to index
    %c0_153 = arith.constant 0 : index
    %173 = vector.load %arg7[%172, %c0_153] : memref<128x128xf32, #tpu.memory_space<vmem>>, vector<1x128xf32>
    %174 = arith.addf %171, %173 : vector<1x128xf32>
    %c2_154 = arith.constant 2 : index
    %c0_155 = arith.constant 0 : index
    %175 = vector.load %arg8[%c2_154, %c0_155] : memref<16x128xf32, #tpu.memory_space<vmem>>, vector<1x128xf32>
    tpu.vector_store %arg8[%c2_154, %c0_155], %174 {strides = array<i32>} : memref<16x128xf32, #tpu.memory_space<vmem>>, vector<1x128xf32>,
    %c3_156 = arith.constant 3 : index
    %c0_157 = arith.constant 0 : index
    %176 = vector.load %arg8[%c3_156, %c0_157] : memref<16x128xf32, #tpu.memory_space<vmem>>, vector<1x128xf32>
    %177 = arith.index_cast %3 : i32 to index
    %c0_158 = arith.constant 0 : index
    %178 = vector.load %arg7[%177, %c0_158] : memref<128x128xf32, #tpu.memory_space<vmem>>, vector<1x128xf32>
    %179 = arith.addf %176, %178 : vector<1x128xf32>
    %c3_159 = arith.constant 3 : index
    %c0_160 = arith.constant 0 : index
    %180 = vector.load %arg8[%c3_159, %c0_160] : memref<16x128xf32, #tpu.memory_space<vmem>>, vector<1x128xf32>
    tpu.vector_store %arg8[%c3_159, %c0_160], %179 {strides = array<i32>} : memref<16x128xf32, #tpu.memory_space<vmem>>, vector<1x128xf32>,
    %c4_161 = arith.constant 4 : index
    %c0_162 = arith.constant 0 : index
    %181 = vector.load %arg8[%c4_161, %c0_162] : memref<16x128xf32, #tpu.memory_space<vmem>>, vector<1x128xf32>
    %182 = arith.index_cast %4 : i32 to index
    %c0_163 = arith.constant 0 : index
    %183 = vector.load %arg7[%182, %c0_163] : memref<128x128xf32, #tpu.memory_space<vmem>>, vector<1x128xf32>
    %184 = arith.addf %181, %183 : vector<1x128xf32>
    %c4_164 = arith.constant 4 : index
    %c0_165 = arith.constant 0 : index
    %185 = vector.load %arg8[%c4_164, %c0_165] : memref<16x128xf32, #tpu.memory_space<vmem>>, vector<1x128xf32>
    tpu.vector_store %arg8[%c4_164, %c0_165], %184 {strides = array<i32>} : memref<16x128xf32, #tpu.memory_space<vmem>>, vector<1x128xf32>,
    %c5_166 = arith.constant 5 : index
    %c0_167 = arith.constant 0 : index
    %186 = vector.load %arg8[%c5_166, %c0_167] : memref<16x128xf32, #tpu.memory_space<vmem>>, vector<1x128xf32>
    %187 = arith.index_cast %5 : i32 to index
    %c0_168 = arith.constant 0 : index
    %188 = vector.load %arg7[%187, %c0_168] : memref<128x128xf32, #tpu.memory_space<vmem>>, vector<1x128xf32>
    %189 = arith.addf %186, %188 : vector<1x128xf32>
    %c5_169 = arith.constant 5 : index
    %c0_170 = arith.constant 0 : index
    %190 = vector.load %arg8[%c5_169, %c0_170] : memref<16x128xf32, #tpu.memory_space<vmem>>, vector<1x128xf32>
    tpu.vector_store %arg8[%c5_169, %c0_170], %189 {strides = array<i32>} : memref<16x128xf32, #tpu.memory_space<vmem>>, vector<1x128xf32>,
    %c6_171 = arith.constant 6 : index
    %c0_172 = arith.constant 0 : index
    %191 = vector.load %arg8[%c6_171, %c0_172] : memref<16x128xf32, #tpu.memory_space<vmem>>, vector<1x128xf32>
    %192 = arith.index_cast %6 : i32 to index
    %c0_173 = arith.constant 0 : index
    %193 = vector.load %arg7[%192, %c0_173] : memref<128x128xf32, #tpu.memory_space<vmem>>, vector<1x128xf32>
    %194 = arith.addf %191, %193 : vector<1x128xf32>
    %c6_174 = arith.constant 6 : index
    %c0_175 = arith.constant 0 : index
    %195 = vector.load %arg8[%c6_174, %c0_175] : memref<16x128xf32, #tpu.memory_space<vmem>>, vector<1x128xf32>
    tpu.vector_store %arg8[%c6_174, %c0_175], %194 {strides = array<i32>} : memref<16x128xf32, #tpu.memory_space<vmem>>, vector<1x128xf32>,
    %c7_176 = arith.constant 7 : index
    %c0_177 = arith.constant 0 : index
    %196 = vector.load %arg8[%c7_176, %c0_177] : memref<16x128xf32, #tpu.memory_space<vmem>>, vector<1x128xf32>
    %197 = arith.index_cast %7 : i32 to index
    %c0_178 = arith.constant 0 : index
    %198 = vector.load %arg7[%197, %c0_178] : memref<128x128xf32, #tpu.memory_space<vmem>>, vector<1x128xf32>
    %199 = arith.addf %196, %198 : vector<1x128xf32>
    %c7_179 = arith.constant 7 : index
    %c0_180 = arith.constant 0 : index
    %200 = vector.load %arg8[%c7_179, %c0_180] : memref<16x128xf32, #tpu.memory_space<vmem>>, vector<1x128xf32>
    tpu.vector_store %arg8[%c7_179, %c0_180], %199 {strides = array<i32>} : memref<16x128xf32, #tpu.memory_space<vmem>>, vector<1x128xf32>,
    %c8_181 = arith.constant 8 : index
    %c0_182 = arith.constant 0 : index
    %201 = vector.load %arg8[%c8_181, %c0_182] : memref<16x128xf32, #tpu.memory_space<vmem>>, vector<1x128xf32>
    %202 = arith.index_cast %8 : i32 to index
    %c0_183 = arith.constant 0 : index
    %203 = vector.load %arg7[%202, %c0_183] : memref<128x128xf32, #tpu.memory_space<vmem>>, vector<1x128xf32>
    %204 = arith.addf %201, %203 : vector<1x128xf32>
    %c8_184 = arith.constant 8 : index
    %c0_185 = arith.constant 0 : index
    %205 = vector.load %arg8[%c8_184, %c0_185] : memref<16x128xf32, #tpu.memory_space<vmem>>, vector<1x128xf32>
    tpu.vector_store %arg8[%c8_184, %c0_185], %204 {strides = array<i32>} : memref<16x128xf32, #tpu.memory_space<vmem>>, vector<1x128xf32>,
    %c9_186 = arith.constant 9 : index
    %c0_187 = arith.constant 0 : index
    %206 = vector.load %arg8[%c9_186, %c0_187] : memref<16x128xf32, #tpu.memory_space<vmem>>, vector<1x128xf32>
    %207 = arith.index_cast %9 : i32 to index
    %c0_188 = arith.constant 0 : index
    %208 = vector.load %arg7[%207, %c0_188] : memref<128x128xf32, #tpu.memory_space<vmem>>, vector<1x128xf32>
    %209 = arith.addf %206, %208 : vector<1x128xf32>
    %c9_189 = arith.constant 9 : index
    %c0_190 = arith.constant 0 : index
    %210 = vector.load %arg8[%c9_189, %c0_190] : memref<16x128xf32, #tpu.memory_space<vmem>>, vector<1x128xf32>
    tpu.vector_store %arg8[%c9_189, %c0_190], %209 {strides = array<i32>} : memref<16x128xf32, #tpu.memory_space<vmem>>, vector<1x128xf32>,
    %c10_191 = arith.constant 10 : index
    %c0_192 = arith.constant 0 : index
    %211 = vector.load %arg8[%c10_191, %c0_192] : memref<16x128xf32, #tpu.memory_space<vmem>>, vector<1x128xf32>
    %212 = arith.index_cast %10 : i32 to index
    %c0_193 = arith.constant 0 : index
    %213 = vector.load %arg7[%212, %c0_193] : memref<128x128xf32, #tpu.memory_space<vmem>>, vector<1x128xf32>
    %214 = arith.addf %211, %213 : vector<1x128xf32>
    %c10_194 = arith.constant 10 : index
    %c0_195 = arith.constant 0 : index
    %215 = vector.load %arg8[%c10_194, %c0_195] : memref<16x128xf32, #tpu.memory_space<vmem>>, vector<1x128xf32>
    tpu.vector_store %arg8[%c10_194, %c0_195], %214 {strides = array<i32>} : memref<16x128xf32, #tpu.memory_space<vmem>>, vector<1x128xf32>,
    %c11_196 = arith.constant 11 : index
    %c0_197 = arith.constant 0 : index
    %216 = vector.load %arg8[%c11_196, %c0_197] : memref<16x128xf32, #tpu.memory_space<vmem>>, vector<1x128xf32>
    %217 = arith.index_cast %11 : i32 to index
    %c0_198 = arith.constant 0 : index
    %218 = vector.load %arg7[%217, %c0_198] : memref<128x128xf32, #tpu.memory_space<vmem>>, vector<1x128xf32>
    %219 = arith.addf %216, %218 : vector<1x128xf32>
    %c11_199 = arith.constant 11 : index
    %c0_200 = arith.constant 0 : index
    %220 = vector.load %arg8[%c11_199, %c0_200] : memref<16x128xf32, #tpu.memory_space<vmem>>, vector<1x128xf32>
    tpu.vector_store %arg8[%c11_199, %c0_200], %219 {strides = array<i32>} : memref<16x128xf32, #tpu.memory_space<vmem>>, vector<1x128xf32>,
    %c12_201 = arith.constant 12 : index
    %c0_202 = arith.constant 0 : index
    %221 = vector.load %arg8[%c12_201, %c0_202] : memref<16x128xf32, #tpu.memory_space<vmem>>, vector<1x128xf32>
    %222 = arith.index_cast %12 : i32 to index
    %c0_203 = arith.constant 0 : index
    %223 = vector.load %arg7[%222, %c0_203] : memref<128x128xf32, #tpu.memory_space<vmem>>, vector<1x128xf32>
    %224 = arith.addf %221, %223 : vector<1x128xf32>
    %c12_204 = arith.constant 12 : index
    %c0_205 = arith.constant 0 : index
    %225 = vector.load %arg8[%c12_204, %c0_205] : memref<16x128xf32, #tpu.memory_space<vmem>>, vector<1x128xf32>
    tpu.vector_store %arg8[%c12_204, %c0_205], %224 {strides = array<i32>} : memref<16x128xf32, #tpu.memory_space<vmem>>, vector<1x128xf32>,
    %c13_206 = arith.constant 13 : index
    %c0_207 = arith.constant 0 : index
    %226 = vector.load %arg8[%c13_206, %c0_207] : memref<16x128xf32, #tpu.memory_space<vmem>>, vector<1x128xf32>
    %227 = arith.index_cast %13 : i32 to index
    %c0_208 = arith.constant 0 : index
    %228 = vector.load %arg7[%227, %c0_208] : memref<128x128xf32, #tpu.memory_space<vmem>>, vector<1x128xf32>
    %229 = arith.addf %226, %228 : vector<1x128xf32>
    %c13_209 = arith.constant 13 : index
    %c0_210 = arith.constant 0 : index
    %230 = vector.load %arg8[%c13_209, %c0_210] : memref<16x128xf32, #tpu.memory_space<vmem>>, vector<1x128xf32>
    tpu.vector_store %arg8[%c13_209, %c0_210], %229 {strides = array<i32>} : memref<16x128xf32, #tpu.memory_space<vmem>>, vector<1x128xf32>,
    %c14_211 = arith.constant 14 : index
    %c0_212 = arith.constant 0 : index
    %231 = vector.load %arg8[%c14_211, %c0_212] : memref<16x128xf32, #tpu.memory_space<vmem>>, vector<1x128xf32>
    %232 = arith.index_cast %14 : i32 to index
    %c0_213 = arith.constant 0 : index
    %233 = vector.load %arg7[%232, %c0_213] : memref<128x128xf32, #tpu.memory_space<vmem>>, vector<1x128xf32>
    %234 = arith.addf %231, %233 : vector<1x128xf32>
    %c14_214 = arith.constant 14 : index
    %c0_215 = arith.constant 0 : index
    %235 = vector.load %arg8[%c14_214, %c0_215] : memref<16x128xf32, #tpu.memory_space<vmem>>, vector<1x128xf32>
    tpu.vector_store %arg8[%c14_214, %c0_215], %234 {strides = array<i32>} : memref<16x128xf32, #tpu.memory_space<vmem>>, vector<1x128xf32>,
    %c15_216 = arith.constant 15 : index
    %c0_217 = arith.constant 0 : index
    %236 = vector.load %arg8[%c15_216, %c0_217] : memref<16x128xf32, #tpu.memory_space<vmem>>, vector<1x128xf32>
    %237 = arith.index_cast %15 : i32 to index
    %c0_218 = arith.constant 0 : index
    %238 = vector.load %arg7[%237, %c0_218] : memref<128x128xf32, #tpu.memory_space<vmem>>, vector<1x128xf32>
    %239 = arith.addf %236, %238 : vector<1x128xf32>
    %c15_219 = arith.constant 15 : index
    %c0_220 = arith.constant 0 : index
    %240 = vector.load %arg8[%c15_219, %c0_220] : memref<16x128xf32, #tpu.memory_space<vmem>>, vector<1x128xf32>
    tpu.vector_store %arg8[%c15_219, %c0_220], %239 {strides = array<i32>} : memref<16x128xf32, #tpu.memory_space<vmem>>, vector<1x128xf32>,
    %c0_221 = arith.constant 0 : index
    %c0_222 = arith.constant 0 : index
    %241 = vector.load %arg7[%c0_221, %c0_222] : memref<128x128xf32, #tpu.memory_space<vmem>>, vector<128x128xf32>
    %242 = arith.truncf %241 : vector<128x128xf32> to vector<128x128xbf16>
    %cst_223 = arith.constant dense<0.000000e+00> : vector<128x128xf32>
    %243 = tpu.matmul %72, %242, %cst_223 {dimension_numbers = #tpu.dot_dimension_numbers<[1], [0], [0], [1], [0, 0, 1, 1], [], []>} : vector<128x128xbf16>, vector<128x128xbf16>, vector<128x128xf32> -> vector<128x128xf32>
    %c0_224 = arith.constant 0 : index
    %c0_225 = arith.constant 0 : index
    %244 = vector.load %arg7[%c0_224, %c0_225] : memref<128x128xf32, #tpu.memory_space<vmem>>, vector<128x128xf32>
    tpu.vector_store %arg7[%c0_224, %c0_225], %243 {strides = array<i32>} : memref<128x128xf32, #tpu.memory_space<vmem>>, vector<128x128xf32>,
    %c0_226 = arith.constant 0 : index
    %c0_227 = arith.constant 0 : index
    %245 = vector.load %arg8[%c0_226, %c0_227] : memref<16x128xf32, #tpu.memory_space<vmem>>, vector<1x128xf32>
    %246 = arith.index_cast %0 : i32 to index
    %c0_228 = arith.constant 0 : index
    %247 = vector.load %arg7[%246, %c0_228] : memref<128x128xf32, #tpu.memory_space<vmem>>, vector<1x128xf32>
    %248 = arith.addf %245, %247 : vector<1x128xf32>
    %c0_229 = arith.constant 0 : index
    %c0_230 = arith.constant 0 : index
    %249 = vector.load %arg8[%c0_229, %c0_230] : memref<16x128xf32, #tpu.memory_space<vmem>>, vector<1x128xf32>
    tpu.vector_store %arg8[%c0_229, %c0_230], %248 {strides = array<i32>} : memref<16x128xf32, #tpu.memory_space<vmem>>, vector<1x128xf32>,
    %c1_231 = arith.constant 1 : index
    %c0_232 = arith.constant 0 : index
    %250 = vector.load %arg8[%c1_231, %c0_232] : memref<16x128xf32, #tpu.memory_space<vmem>>, vector<1x128xf32>
    %251 = arith.index_cast %1 : i32 to index
    %c0_233 = arith.constant 0 : index
    %252 = vector.load %arg7[%251, %c0_233] : memref<128x128xf32, #tpu.memory_space<vmem>>, vector<1x128xf32>
    %253 = arith.addf %250, %252 : vector<1x128xf32>
    %c1_234 = arith.constant 1 : index
    %c0_235 = arith.constant 0 : index
    %254 = vector.load %arg8[%c1_234, %c0_235] : memref<16x128xf32, #tpu.memory_space<vmem>>, vector<1x128xf32>
    tpu.vector_store %arg8[%c1_234, %c0_235], %253 {strides = array<i32>} : memref<16x128xf32, #tpu.memory_space<vmem>>, vector<1x128xf32>,
    %c2_236 = arith.constant 2 : index
    %c0_237 = arith.constant 0 : index
    %255 = vector.load %arg8[%c2_236, %c0_237] : memref<16x128xf32, #tpu.memory_space<vmem>>, vector<1x128xf32>
    %256 = arith.index_cast %2 : i32 to index
    %c0_238 = arith.constant 0 : index
    %257 = vector.load %arg7[%256, %c0_238] : memref<128x128xf32, #tpu.memory_space<vmem>>, vector<1x128xf32>
    %258 = arith.addf %255, %257 : vector<1x128xf32>
    %c2_239 = arith.constant 2 : index
    %c0_240 = arith.constant 0 : index
    %259 = vector.load %arg8[%c2_239, %c0_240] : memref<16x128xf32, #tpu.memory_space<vmem>>, vector<1x128xf32>
    tpu.vector_store %arg8[%c2_239, %c0_240], %258 {strides = array<i32>} : memref<16x128xf32, #tpu.memory_space<vmem>>, vector<1x128xf32>,
    %c3_241 = arith.constant 3 : index
    %c0_242 = arith.constant 0 : index
    %260 = vector.load %arg8[%c3_241, %c0_242] : memref<16x128xf32, #tpu.memory_space<vmem>>, vector<1x128xf32>
    %261 = arith.index_cast %3 : i32 to index
    %c0_243 = arith.constant 0 : index
    %262 = vector.load %arg7[%261, %c0_243] : memref<128x128xf32, #tpu.memory_space<vmem>>, vector<1x128xf32>
    %263 = arith.addf %260, %262 : vector<1x128xf32>
    %c3_244 = arith.constant 3 : index
    %c0_245 = arith.constant 0 : index
    %264 = vector.load %arg8[%c3_244, %c0_245] : memref<16x128xf32, #tpu.memory_space<vmem>>, vector<1x128xf32>
    tpu.vector_store %arg8[%c3_244, %c0_245], %263 {strides = array<i32>} : memref<16x128xf32, #tpu.memory_space<vmem>>, vector<1x128xf32>,
    %c4_246 = arith.constant 4 : index
    %c0_247 = arith.constant 0 : index
    %265 = vector.load %arg8[%c4_246, %c0_247] : memref<16x128xf32, #tpu.memory_space<vmem>>, vector<1x128xf32>
    %266 = arith.index_cast %4 : i32 to index
    %c0_248 = arith.constant 0 : index
    %267 = vector.load %arg7[%266, %c0_248] : memref<128x128xf32, #tpu.memory_space<vmem>>, vector<1x128xf32>
    %268 = arith.addf %265, %267 : vector<1x128xf32>
    %c4_249 = arith.constant 4 : index
    %c0_250 = arith.constant 0 : index
    %269 = vector.load %arg8[%c4_249, %c0_250] : memref<16x128xf32, #tpu.memory_space<vmem>>, vector<1x128xf32>
    tpu.vector_store %arg8[%c4_249, %c0_250], %268 {strides = array<i32>} : memref<16x128xf32, #tpu.memory_space<vmem>>, vector<1x128xf32>,
    %c5_251 = arith.constant 5 : index
    %c0_252 = arith.constant 0 : index
    %270 = vector.load %arg8[%c5_251, %c0_252] : memref<16x128xf32, #tpu.memory_space<vmem>>, vector<1x128xf32>
    %271 = arith.index_cast %5 : i32 to index
    %c0_253 = arith.constant 0 : index
    %272 = vector.load %arg7[%271, %c0_253] : memref<128x128xf32, #tpu.memory_space<vmem>>, vector<1x128xf32>
    %273 = arith.addf %270, %272 : vector<1x128xf32>
    %c5_254 = arith.constant 5 : index
    %c0_255 = arith.constant 0 : index
    %274 = vector.load %arg8[%c5_254, %c0_255] : memref<16x128xf32, #tpu.memory_space<vmem>>, vector<1x128xf32>
    tpu.vector_store %arg8[%c5_254, %c0_255], %273 {strides = array<i32>} : memref<16x128xf32, #tpu.memory_space<vmem>>, vector<1x128xf32>,
    %c6_256 = arith.constant 6 : index
    %c0_257 = arith.constant 0 : index
    %275 = vector.load %arg8[%c6_256, %c0_257] : memref<16x128xf32, #tpu.memory_space<vmem>>, vector<1x128xf32>
    %276 = arith.index_cast %6 : i32 to index
    %c0_258 = arith.constant 0 : index
    %277 = vector.load %arg7[%276, %c0_258] : memref<128x128xf32, #tpu.memory_space<vmem>>, vector<1x128xf32>
    %278 = arith.addf %275, %277 : vector<1x128xf32>
    %c6_259 = arith.constant 6 : index
    %c0_260 = arith.constant 0 : index
    %279 = vector.load %arg8[%c6_259, %c0_260] : memref<16x128xf32, #tpu.memory_space<vmem>>, vector<1x128xf32>
    tpu.vector_store %arg8[%c6_259, %c0_260], %278 {strides = array<i32>} : memref<16x128xf32, #tpu.memory_space<vmem>>, vector<1x128xf32>,
    %c7_261 = arith.constant 7 : index
    %c0_262 = arith.constant 0 : index
    %280 = vector.load %arg8[%c7_261, %c0_262] : memref<16x128xf32, #tpu.memory_space<vmem>>, vector<1x128xf32>
    %281 = arith.index_cast %7 : i32 to index
    %c0_263 = arith.constant 0 : index
    %282 = vector.load %arg7[%281, %c0_263] : memref<128x128xf32, #tpu.memory_space<vmem>>, vector<1x128xf32>
    %283 = arith.addf %280, %282 : vector<1x128xf32>
    %c7_264 = arith.constant 7 : index
    %c0_265 = arith.constant 0 : index
    %284 = vector.load %arg8[%c7_264, %c0_265] : memref<16x128xf32, #tpu.memory_space<vmem>>, vector<1x128xf32>
    tpu.vector_store %arg8[%c7_264, %c0_265], %283 {strides = array<i32>} : memref<16x128xf32, #tpu.memory_space<vmem>>, vector<1x128xf32>,
    %c8_266 = arith.constant 8 : index
    %c0_267 = arith.constant 0 : index
    %285 = vector.load %arg8[%c8_266, %c0_267] : memref<16x128xf32, #tpu.memory_space<vmem>>, vector<1x128xf32>
    %286 = arith.index_cast %8 : i32 to index
    %c0_268 = arith.constant 0 : index
    %287 = vector.load %arg7[%286, %c0_268] : memref<128x128xf32, #tpu.memory_space<vmem>>, vector<1x128xf32>
    %288 = arith.addf %285, %287 : vector<1x128xf32>
    %c8_269 = arith.constant 8 : index
    %c0_270 = arith.constant 0 : index
    %289 = vector.load %arg8[%c8_269, %c0_270] : memref<16x128xf32, #tpu.memory_space<vmem>>, vector<1x128xf32>
    tpu.vector_store %arg8[%c8_269, %c0_270], %288 {strides = array<i32>} : memref<16x128xf32, #tpu.memory_space<vmem>>, vector<1x128xf32>,
    %c9_271 = arith.constant 9 : index
    %c0_272 = arith.constant 0 : index
    %290 = vector.load %arg8[%c9_271, %c0_272] : memref<16x128xf32, #tpu.memory_space<vmem>>, vector<1x128xf32>
    %291 = arith.index_cast %9 : i32 to index
    %c0_273 = arith.constant 0 : index
    %292 = vector.load %arg7[%291, %c0_273] : memref<128x128xf32, #tpu.memory_space<vmem>>, vector<1x128xf32>
    %293 = arith.addf %290, %292 : vector<1x128xf32>
    %c9_274 = arith.constant 9 : index
    %c0_275 = arith.constant 0 : index
    %294 = vector.load %arg8[%c9_274, %c0_275] : memref<16x128xf32, #tpu.memory_space<vmem>>, vector<1x128xf32>
    tpu.vector_store %arg8[%c9_274, %c0_275], %293 {strides = array<i32>} : memref<16x128xf32, #tpu.memory_space<vmem>>, vector<1x128xf32>,
    %c10_276 = arith.constant 10 : index
    %c0_277 = arith.constant 0 : index
    %295 = vector.load %arg8[%c10_276, %c0_277] : memref<16x128xf32, #tpu.memory_space<vmem>>, vector<1x128xf32>
    %296 = arith.index_cast %10 : i32 to index
    %c0_278 = arith.constant 0 : index
    %297 = vector.load %arg7[%296, %c0_278] : memref<128x128xf32, #tpu.memory_space<vmem>>, vector<1x128xf32>
    %298 = arith.addf %295, %297 : vector<1x128xf32>
    %c10_279 = arith.constant 10 : index
    %c0_280 = arith.constant 0 : index
    %299 = vector.load %arg8[%c10_279, %c0_280] : memref<16x128xf32, #tpu.memory_space<vmem>>, vector<1x128xf32>
    tpu.vector_store %arg8[%c10_279, %c0_280], %298 {strides = array<i32>} : memref<16x128xf32, #tpu.memory_space<vmem>>, vector<1x128xf32>,
    %c11_281 = arith.constant 11 : index
    %c0_282 = arith.constant 0 : index
    %300 = vector.load %arg8[%c11_281, %c0_282] : memref<16x128xf32, #tpu.memory_space<vmem>>, vector<1x128xf32>
    %301 = arith.index_cast %11 : i32 to index
    %c0_283 = arith.constant 0 : index
    %302 = vector.load %arg7[%301, %c0_283] : memref<128x128xf32, #tpu.memory_space<vmem>>, vector<1x128xf32>
    %303 = arith.addf %300, %302 : vector<1x128xf32>
    %c11_284 = arith.constant 11 : index
    %c0_285 = arith.constant 0 : index
    %304 = vector.load %arg8[%c11_284, %c0_285] : memref<16x128xf32, #tpu.memory_space<vmem>>, vector<1x128xf32>
    tpu.vector_store %arg8[%c11_284, %c0_285], %303 {strides = array<i32>} : memref<16x128xf32, #tpu.memory_space<vmem>>, vector<1x128xf32>,
    %c12_286 = arith.constant 12 : index
    %c0_287 = arith.constant 0 : index
    %305 = vector.load %arg8[%c12_286, %c0_287] : memref<16x128xf32, #tpu.memory_space<vmem>>, vector<1x128xf32>
    %306 = arith.index_cast %12 : i32 to index
    %c0_288 = arith.constant 0 : index
    %307 = vector.load %arg7[%306, %c0_288] : memref<128x128xf32, #tpu.memory_space<vmem>>, vector<1x128xf32>
    %308 = arith.addf %305, %307 : vector<1x128xf32>
    %c12_289 = arith.constant 12 : index
    %c0_290 = arith.constant 0 : index
    %309 = vector.load %arg8[%c12_289, %c0_290] : memref<16x128xf32, #tpu.memory_space<vmem>>, vector<1x128xf32>
    tpu.vector_store %arg8[%c12_289, %c0_290], %308 {strides = array<i32>} : memref<16x128xf32, #tpu.memory_space<vmem>>, vector<1x128xf32>,
    %c13_291 = arith.constant 13 : index
    %c0_292 = arith.constant 0 : index
    %310 = vector.load %arg8[%c13_291, %c0_292] : memref<16x128xf32, #tpu.memory_space<vmem>>, vector<1x128xf32>
    %311 = arith.index_cast %13 : i32 to index
    %c0_293 = arith.constant 0 : index
    %312 = vector.load %arg7[%311, %c0_293] : memref<128x128xf32, #tpu.memory_space<vmem>>, vector<1x128xf32>
    %313 = arith.addf %310, %312 : vector<1x128xf32>
    %c13_294 = arith.constant 13 : index
    %c0_295 = arith.constant 0 : index
    %314 = vector.load %arg8[%c13_294, %c0_295] : memref<16x128xf32, #tpu.memory_space<vmem>>, vector<1x128xf32>
    tpu.vector_store %arg8[%c13_294, %c0_295], %313 {strides = array<i32>} : memref<16x128xf32, #tpu.memory_space<vmem>>, vector<1x128xf32>,
    %c14_296 = arith.constant 14 : index
    %c0_297 = arith.constant 0 : index
    %315 = vector.load %arg8[%c14_296, %c0_297] : memref<16x128xf32, #tpu.memory_space<vmem>>, vector<1x128xf32>
    %316 = arith.index_cast %14 : i32 to index
    %c0_298 = arith.constant 0 : index
    %317 = vector.load %arg7[%316, %c0_298] : memref<128x128xf32, #tpu.memory_space<vmem>>, vector<1x128xf32>
    %318 = arith.addf %315, %317 : vector<1x128xf32>
    %c14_299 = arith.constant 14 : index
    %c0_300 = arith.constant 0 : index
    %319 = vector.load %arg8[%c14_299, %c0_300] : memref<16x128xf32, #tpu.memory_space<vmem>>, vector<1x128xf32>
    tpu.vector_store %arg8[%c14_299, %c0_300], %318 {strides = array<i32>} : memref<16x128xf32, #tpu.memory_space<vmem>>, vector<1x128xf32>,
    %c15_301 = arith.constant 15 : index
    %c0_302 = arith.constant 0 : index
    %320 = vector.load %arg8[%c15_301, %c0_302] : memref<16x128xf32, #tpu.memory_space<vmem>>, vector<1x128xf32>
    %321 = arith.index_cast %15 : i32 to index
    %c0_303 = arith.constant 0 : index
    %322 = vector.load %arg7[%321, %c0_303] : memref<128x128xf32, #tpu.memory_space<vmem>>, vector<1x128xf32>
    %323 = arith.addf %320, %322 : vector<1x128xf32>
    %c15_304 = arith.constant 15 : index
    %c0_305 = arith.constant 0 : index
    %324 = vector.load %arg8[%c15_304, %c0_305] : memref<16x128xf32, #tpu.memory_space<vmem>>, vector<1x128xf32>
    tpu.vector_store %arg8[%c15_304, %c0_305], %323 {strides = array<i32>} : memref<16x128xf32, #tpu.memory_space<vmem>>, vector<1x128xf32>,
    %c0_306 = arith.constant 0 : index
    %c0_307 = arith.constant 0 : index
    %325 = vector.load %arg8[%c0_306, %c0_307] : memref<16x128xf32, #tpu.memory_space<vmem>>, vector<16x128xf32>
    %326 = vector.extract_strided_slice %325 {offsets = [0, 0], sizes = [8, 128], strides = [1, 1]} : vector<16x128xf32> to vector<8x128xf32>
    %327 = vector.extract_strided_slice %325 {offsets = [8, 0], sizes = [8, 128], strides = [1, 1]} : vector<16x128xf32> to vector<8x128xf32>
    %328 = arith.mulf %326, %327 : vector<8x128xf32>
    %cst_308 = arith.constant 1.000000e+00 : f32
    %329 = vector.broadcast %cst_308 : f32 to vector<1x128xf32>
    %cst_309 = arith.constant dense<0.000000e+00> : vector<1x8xf32>
    %330 = tpu.matmul %329, %328, %cst_309 {dimension_numbers = #tpu.dot_dimension_numbers<[1], [1], [0], [0], [0, 0, 1, 0], [], []>} : vector<1x128xf32>, vector<8x128xf32>, vector<1x8xf32> -> vector<1x8xf32>
    %331 = arith.negf %330 : vector<1x8xf32>
    %332 = math.exp %331 : vector<1x8xf32>
    %cst_310 = arith.constant 1.000000e+00 : f32
    %333 = vector.broadcast %cst_310 : f32 to vector<1x8xf32>
    %334 = arith.addf %333, %332 : vector<1x8xf32>
    %335 = arith.divf %333, %334 : vector<1x8xf32>
    %c0_311 = arith.constant 0 : index
    %c0_312 = arith.constant 0 : index
    %336 = vector.load %arg4[%c0_311, %c0_312] : memref<1x8xf32, #tpu.memory_space<vmem>>, vector<1x8xf32>
    tpu.vector_store %arg4[%c0_311, %c0_312], %335 {strides = array<i32>} : memref<1x8xf32, #tpu.memory_space<vmem>>, vector<1x8xf32>,
    %337 = arith.mulf %325, %325 : vector<16x128xf32>
    %cst_313 = arith.constant dense<0.000000e+00> : vector<16xf32>
    %338 = vector.multi_reduction <add>, %337, %cst_313 [1] : vector<16x128xf32> to vector<16xf32>
    %339 = vector.shape_cast %338 : vector<16xf32> to vector<16x1xf32>
    %cst_314 = arith.constant dense<0.000000e+00> : vector<1xf32>
    %340 = vector.multi_reduction <add>, %339, %cst_314 [0] : vector<16x1xf32> to vector<1xf32>
    %341 = vector.shape_cast %340 : vector<1xf32> to vector<1x1xf32>
    %cst_315 = arith.constant 1.250000e-04 : f32
    %342 = vector.broadcast %cst_315 : f32 to vector<1x1xf32>
    %343 = arith.mulf %342, %341 : vector<1x1xf32>
    %c0_316 = arith.constant 0 : index
    %c0_317 = arith.constant 0 : index
    %344 = vector.load %arg5[%c0_316, %c0_317] : memref<1x1xf32, #tpu.memory_space<vmem>>, vector<1x1xf32>
    tpu.vector_store %arg5[%c0_316, %c0_317], %343 {strides = array<i32>} : memref<1x1xf32, #tpu.memory_space<vmem>>, vector<1x1xf32>,
    return
  }
  func.func @transform_2(%arg0: i32, %arg1: memref<16xi32, #tpu.memory_space<smem>>) -> (i32, i32) {
    %c0_i32 = arith.constant 0 : i32
    %c0_i32_0 = arith.constant 0 : i32
    %c0_i32_1 = arith.constant 0 : i32
    return %c0_i32, %c0_i32_0 : i32, i32
  }
  func.func @transform_3(%arg0: i32, %arg1: memref<16xi32, #tpu.memory_space<smem>>) -> (i32, i32) {
    %c0_i32 = arith.constant 0 : i32
    %c0_i32_0 = arith.constant 0 : i32
    %c0_i32_1 = arith.constant 0 : i32
    return %c0_i32, %c0_i32_0 : i32, i32
  }
}

</mosaic_0001>

<bundles_post_ra>
// kernel: _forward_impl.1
= control target key start
LH: loop header
LB: loop body
LE: loop exit
PB: predicated region body
PF: predicated region fallthrough
CT: control target
= control target key end

     0   :  { %s972_s18 = smov [#allocation7]   ;;  %s1223_s0 = inlined_call_operand.vmem [shape: s32[16], index: 0, kind: input, shape index: {}]   ;;  %s1224_s1 = inlined_call_operand.hbm [shape: bf16[128,128], index: 1, kind: input, shape index: {}]   ;;  %s1225_s2 = inlined_call_operand.hbm [shape: f32[128,128], index: 2, kind: input, shape index: {}]   ;;  %s1226_s3 = inlined_call_operand.hbm [shape: f32[1,8], index: 3, kind: output, shape index: {0}]   ;;  %s1227_s4 = inlined_call_operand.hbm [shape: f32[1,1], index: 4, kind: output, shape index: {1}]  }
   0x1   :  { %s11_s17 = sshll.u32 %s1223_s0, 4  ;;  %s12_s17 = int_to_ptr.vmem [resolvable:$true] %s11_s17 }
   0x2   :  { %14 = dma.vmem_to_smem %s12_s17, 16, %s972_s18, [#allocation6] }
   0x3   :  { %962 = dma.done.wait [#allocation6], 16 }
   0x4   :  { %963 = vsyncadd [#allocation6], 4294967280 }
   0x5   :  { %17 = sfence }
   0x6   :  { %18 = vsyncpa [#allocation9], 0 }
   0x7   :  { %19 = vsyncpa [#allocation11], 0  ;;  %s20_s19 = sld [smem:[#allocation7]]  ;;  %s43_s0 = sshll.u32 %s1224_s1, 4  ;;  %s44_s0 = int_to_ptr.hbm [resolvable:$true] %s43_s0 }
   0x8   :  { %s1006_s20 = sld [smem:[#allocation7 + $0x1]]  ;;  %s973_s5 = smov [#allocation2]  }
   0x9   :  { %s1008_s21 = sld [smem:[#allocation7 + $0x2]]  ;;  %s45_s6 = sshll.u32 %s973_s5, 4  ;;  %s46_s6 = int_to_ptr.vmem [resolvable:$true] %s45_s6 }
   0xa   :  { %s1010_s22 = sld [smem:[#allocation7 + $0x3]]  ;;  %s57_s10 = sshll.u32 %s1225_s2, 4  ;;  %s58_s10 = int_to_ptr.hbm [resolvable:$true] %s57_s10 }
   0xb   :  { %s1012_s23 = sld [smem:[#allocation7 + $0x4]]  ;;  %s974_s11 = smov [#allocation3]  }
   0xc   :  { %s1017_s26 = sld [smem:[#allocation7 + $0x5]]  ;;  %s59_s12 = sshll.u32 %s974_s11, 4  ;;  %s60_s12 = int_to_ptr.vmem [resolvable:$true] %s59_s12 }
   0xd   :  { %s1019_s27 = sld [smem:[#allocation7 + $0x6]] }
   0xe   :  { %s1021_s28 = sld [smem:[#allocation7 + $0x7]] }
   0xf   :  { %s1023_s29 = sld [smem:[#allocation7 + $0x8]] }
  0x10   :  { %s1025_s30 = sld [smem:[#allocation7 + $0x9]] }
  0x11   :  { %s1027_s7 = sld [smem:[#allocation7 + $0xa]] }
  0x12   :  { %s1032_s1 = sld [smem:[#allocation7 + $0xb]] }
  0x13   :  { %s1034_s13 = sld [smem:[#allocation7 + $0xc]] }
  0x14   :  { %s1036_s14 = sld [smem:[#allocation7 + $0xd]] }
  0x15   :  { %s1038_s15 = sld [smem:[#allocation7 + $0xe]] }
  0x16   :  { %s1040_s16 = sld [smem:[#allocation7 + $0xf]] }
  0x17   :  { %48 = dma.hbm_to_vmem [thread:$0]  %s44_s0, 1024, %s46_s6, [#allocation5] }
  0x18   :  { %62 = dma.hbm_to_vmem [thread:$0]  %s58_s10, 2048, %s60_s12, [#allocation5 + $0x1] }
  0x19   :  { %964 = dma.done.wait [#allocation5 + $0x1], 2048 }
  0x1a   :  { %965 = vsyncadd [#allocation5 + $0x1], 4294965248  ;;  %s1042_s2 = scalar_lea.vmem [#allocation3], %s20_s19  ;;  %s1046_s17 = scalar_lea.vmem [#allocation3], %s1006_s20 }
  0x1b   :  { %v67_v0 = vld [vmem:[%s1042_s2] sm:$0x1]  ;;  %s1050_s18 = scalar_lea.vmem [#allocation3], %s1008_s21  ;;  %s1054_s24 = scalar_lea.vmem [#allocation3], %s1010_s22 }
  0x1c   :  { %v70_v1 = vld [vmem:[%s1046_s17] sm:$0x1]  ;;  %68 = vst [vmem:[#allocation4] sm:$0x1] %v67_v0  ;;  %s1058_s19 = scalar_lea.vmem [#allocation3], %s1012_s23  ;;  %s1062_s20 = scalar_lea.vmem [#allocation3], %s1017_s26 }
  0x1d   :  { %v73_v2 = vld [vmem:[%s1050_s18] sm:$0x1]  ;;  %71 = vst [vmem:[#allocation4 + $0x1] sm:$0x1] %v70_v1  ;;  %s1066_s21 = scalar_lea.vmem [#allocation3], %s1019_s27  ;;  %s1070_s22 = scalar_lea.vmem [#allocation3], %s1021_s28 }
  0x1e   :  { %v76_v3 = vld [vmem:[%s1054_s24] sm:$0x1]  ;;  %74 = vst [vmem:[#allocation4 + $0x2] sm:$0x1] %v73_v2  ;;  %s1074_s23 = scalar_lea.vmem [#allocation3], %s1023_s29  ;;  %s1078_s25 = scalar_lea.vmem [#allocation3], %s1025_s30 }
  0x1f   :  { %v79_v4 = vld [vmem:[%s1058_s19] sm:$0x1]  ;;  %77 = vst [vmem:[#allocation4 + $0x3] sm:$0x1] %v76_v3  ;;  %s1082_s0 = scalar_lea.vmem [#allocation3], %s1027_s7  ;;  %s1086_s26 = scalar_lea.vmem [#allocation3], %s1032_s1 }
  0x20   :  { %v82_v5 = vld [vmem:[%s1062_s20] sm:$0x1]  ;;  %80 = vst [vmem:[#allocation4 + $0x4] sm:$0x1] %v79_v4  ;;  %s1090_s27 = scalar_lea.vmem [#allocation3], %s1034_s13  ;;  %s1094_s28 = scalar_lea.vmem [#allocation3], %s1036_s14 }
  0x21   :  { %v85_v6 = vld [vmem:[%s1066_s21] sm:$0x1]  ;;  %83 = vst [vmem:[#allocation4 + $0x5] sm:$0x1] %v82_v5  ;;  %s1098_s29 = scalar_lea.vmem [#allocation3], %s1038_s15  ;;  %s1102_s30 = scalar_lea.vmem [#allocation3], %s1040_s16 }
  0x22   :  { %v88_v7 = vld [vmem:[%s1070_s22] sm:$0x1]  ;;  %86 = vst [vmem:[#allocation4 + $0x6] sm:$0x1] %v85_v6 }
  0x23   :  { %v91_v8 = vld [vmem:[%s1074_s23] sm:$0x1]  ;;  %89 = vst [vmem:[#allocation4 + $0x7] sm:$0x1] %v88_v7 }
  0x24   :  { %v94_v9 = vld [vmem:[%s1078_s25] sm:$0x1]  ;;  %92 = vst [vmem:[#allocation4 + $0x8] sm:$0x1] %v91_v8 }
  0x25   :  { %v97_v10 = vld [vmem:[%s1082_s0] sm:$0x1]  ;;  %95 = vst [vmem:[#allocation4 + $0x9] sm:$0x1] %v94_v9 }
  0x26   :  { %v100_v11 = vld [vmem:[%s1086_s26] sm:$0x1]  ;;  %98 = vst [vmem:[#allocation4 + $0xa] sm:$0x1] %v97_v10 }
  0x27   :  { %v103_v12 = vld [vmem:[%s1090_s27] sm:$0x1]  ;;  %101 = vst [vmem:[#allocation4 + $0xb] sm:$0x1] %v100_v11 }
  0x28   :  { %v106_v13 = vld [vmem:[%s1094_s28] sm:$0x1]  ;;  %104 = vst [vmem:[#allocation4 + $0xc] sm:$0x1] %v103_v12 }
  0x29   :  { %v109_v14 = vld [vmem:[%s1098_s29] sm:$0x1]  ;;  %107 = vst [vmem:[#allocation4 + $0xd] sm:$0x1] %v106_v13 }
  0x2a   :  { %v112_v15 = vld [vmem:[%s1102_s30] sm:$0x1]  ;;  %110 = vst [vmem:[#allocation4 + $0xe] sm:$0x1] %v109_v14 }
  0x2b   :  { %113 = vst [vmem:[#allocation4 + $0xf] sm:$0x1] %v112_v15 }
  0x2c   :  { %966 = dma.done.wait [#allocation5], 1024 }
  0x2d   :  { %967 = vsyncadd [#allocation5], 4294966272  ;;  %v148_v16 = vld [vmem:[#allocation3 + $0x70] sm:$0xff]  ;;  %v149_v17 = vld [vmem:[#allocation3 + $0x78] sm:$0xff]  ;;  %s976_s5 = smov [#allocation10]   ;;  %s719_s9 = sshll.u32 %s1227_s4, 4  ;;  %s720_s9 = int_to_ptr.hbm [resolvable:$true] %s719_s9 }
  0x2e   :  { %v146_v18 = vld [vmem:[#allocation3 + $0x60] sm:$0xff]  ;;  %v157_v19 = vpack.c.bf16 %v149_v17, %v148_v16  ;;  %v147_v20 = vld [vmem:[#allocation3 + $0x68] sm:$0xff]  ;;  %v144_v22 = vld [vmem:[#allocation3 + $0x50] sm:$0xff]  ;;  %s717_s6 = sshll.u32 %s976_s5, 4  ;;  %vm699_vm0 = vcmask 0   ;;  %s977_s4 = smov [#allocation8]   ;;  %s718_s6 = int_to_ptr.vmem [resolvable:$true] %s717_s6 }
  0x2f   :  { %v156_v21 = vpack.c.bf16 %v147_v20, %v146_v18  ;;  %v145_v23 = vld [vmem:[#allocation3 + $0x58] sm:$0xff]  ;;  %v142_v25 = vld [vmem:[#allocation3 + $0x40] sm:$0xff]  ;;  %v143_v26 = vld [vmem:[#allocation3 + $0x48] sm:$0xff]  ;;  %s706_s10 = sshll.u32 %s977_s4, 4  ;;  %s708_s12 = sshll.u32 %s1226_s3, 4  ;;  %vm683_vm4 = vcmask 57344   ;;  %s707_s10 = int_to_ptr.vmem [resolvable:$true] %s706_s10  ;;  %s709_s12 = int_to_ptr.hbm [resolvable:$true] %s708_s12 }
  0x30   :  { %206 = vmatpush.bf16.msra.mxu0 %v157_v19  ;;  %820 = vmatpush.bf16.msra.mxu3 %v157_v19  ;;  %v155_v24 = vpack.c.bf16 %v145_v23, %v144_v22  ;;  %v154_v27 = vpack.c.bf16 %v143_v26, %v142_v25  ;;  %v140_v28 = vld [vmem:[#allocation3 + $0x30] sm:$0xff]  ;;  %v141_v29 = vld [vmem:[#allocation3 + $0x38] sm:$0xff]  ;;  %v138_v31 = vld [vmem:[#allocation3 + $0x20] sm:$0xff] }
  0x31   :  { %v153_v30 = vpack.c.bf16 %v141_v29, %v140_v28  ;;  %v139_v32 = vld [vmem:[#allocation3 + $0x28] sm:$0xff]  ;;  %v136_v34 = vld [vmem:[#allocation3 + $0x10] sm:$0xff]  ;;  %v137_v35 = vld [vmem:[#allocation3 + $0x18] sm:$0xff] }
  0x32   :  { %v152_v33 = vpack.c.bf16 %v139_v32, %v138_v31  ;;  %v151_v36 = vpack.c.bf16 %v137_v35, %v136_v34  ;;  %v134_v37 = vld [vmem:[#allocation3] sm:$0xff]  ;;  %v135_v38 = vld [vmem:[#allocation3 + $0x8] sm:$0xff]  ;;  %v1111_v42 = vld [vmem:[#allocation2 + $0x10] sm:$0xff] }
  0x33   :  { %v150_v39 = vpack.c.bf16 %v135_v38, %v134_v37  ;;  %v1105_v40 = vld [vmem:[#allocation2] sm:$0xff]  ;;  %v1108_v41 = vld [vmem:[#allocation2 + $0x8] sm:$0xff]  ;;  %v1114_v43 = vld [vmem:[#allocation2 + $0x38] sm:$0xff] }
  0x34   :  { %207 = vmatpush.bf16.msra.mxu0 %v156_v21  ;;  %821 = vmatpush.bf16.msra.mxu3 %v156_v21  ;;  %v1117_v44 = vld [vmem:[#allocation2 + $0x18] sm:$0xff]  ;;  %v1120_v45 = vld [vmem:[#allocation2 + $0x20] sm:$0xff]  ;;  %v1123_v46 = vld [vmem:[#allocation2 + $0x28] sm:$0xff] }
  0x35   :  { %v1126_v47 = vld [vmem:[#allocation2 + $0x30] sm:$0xff]  ;;  %v271_v6 = vld [vmem:[#allocation4] sm:$0x1]  ;;  %v275_v7 = vld [vmem:[#allocation4 + $0x1] sm:$0x1] }
  0x36   :  { %v279_v8 = vld [vmem:[#allocation4 + $0x2] sm:$0x1]  ;;  %v283_v15 = vld [vmem:[#allocation4 + $0x3] sm:$0x1]  ;;  %v287_v18 = vld [vmem:[#allocation4 + $0x4] sm:$0x1] }
  0x37   :  { %v291_v21 = vld [vmem:[#allocation4 + $0x5] sm:$0x1]  ;;  %v299_v28 = vld [vmem:[#allocation4 + $0x7] sm:$0x1]  ;;  %v303_v31 = vld [vmem:[#allocation4 + $0x8] sm:$0x1] }
  0x38   :  { %208 = vmatpush.bf16.msra.mxu0 %v155_v24  ;;  %822 = vmatpush.bf16.msra.mxu3 %v155_v24  ;;  %v295_v24 = vld [vmem:[#allocation4 + $0x6] sm:$0x1]  ;;  %v307_v34 = vld [vmem:[#allocation4 + $0x9] sm:$0x1]  ;;  %v311_v37 = vld [vmem:[#allocation4 + $0xa] sm:$0x1] }
  0x3c   :  { %209 = vmatpush.bf16.msra.mxu0 %v154_v27  ;;  %823 = vmatpush.bf16.msra.mxu3 %v154_v27 }
  0x40   :  { %210 = vmatpush.bf16.msra.mxu0 %v153_v30  ;;  %824 = vmatpush.bf16.msra.mxu3 %v153_v30 }
  0x44   :  { %211 = vmatpush.bf16.msra.mxu0 %v152_v33  ;;  %825 = vmatpush.bf16.msra.mxu3 %v152_v33 }
  0x48   :  { %212 = vmatpush.bf16.msra.mxu0 %v151_v36  ;;  %826 = vmatpush.bf16.msra.mxu3 %v151_v36 }
  0x4c   :  { %213 = vmatpush.bf16.msra.mxu0 %v150_v39  ;;  %827 = vmatpush.bf16.msra.mxu3 %v150_v39 }
  0x4f   :  { %214 = vmatmul.bf16.vlgmr.msra.gmra.mxu0 %v1105_v40  ;;  %249 = vmatmul.bf16.vlgmr.msra.gmra.mxu3 %v1114_v43 }
  0x5f   :  { %219 = vmatmul.bf16.gmra.mxu0 %v1108_v41 }
  0x6f   :  { %224 = vmatmul.bf16.gmra.mxu0 %v1111_v42 }
  0x7f   :  { %229 = vmatmul.bf16.gmra.mxu0 %v1117_v44 }
  0x8f   :  { %234 = vmatmul.bf16.gmra.mxu0 %v1120_v45 }
  0x9f   :  { %239 = vmatmul.bf16.gmra.mxu0 %v1123_v46 }
  0xaf   :  { %244 = vmatmul.bf16.gmra.mxu0 %v1126_v47 }
  0xcc   :  { %v215_v48 = vpop.f32.mrf.mxu0 }
  0xcd   :  { %255 = vst [vmem:[#allocation3] sm:$0xff] %v215_v48 }
  0xd2   :  { %v250_v58 = vpop.f32.mrf.mxu3 }
  0xd3   :  { %269 = vst [vmem:[#allocation3 + $0x70] sm:$0xff] %v250_v58 }
  0xd4   :  { %v217_v49 = vpop.f32.mrf.mxu0 }
  0xd5   :  { %256 = vst [vmem:[#allocation3 + $0x8] sm:$0xff] %v217_v49  ;;  %v1129_v50 = vpack.c.bf16 %v217_v49, %v215_v48  ;;  %v315_v48 = vld [vmem:[#allocation4 + $0xb] sm:$0x1] }
  0xda   :  { %v252_v60 = vpop.f32.mrf.mxu3 }
  0xdb   :  { %270 = vst [vmem:[#allocation3 + $0x78] sm:$0xff] %v252_v60  ;;  %v358_v61 = vpack.c.bf16 %v252_v60, %v250_v58  ;;  %v327_v60 = vld [vmem:[#allocation4 + $0xe] sm:$0x1] }
  0xdc   :  { %v220_v51 = vpop.f32.mrf.mxu0 }
  0xdd   :  { %257 = vst [vmem:[#allocation3 + $0x10] sm:$0xff] %v220_v51  ;;  %359 = vmatpush.bf16.msra.mxu1 %v358_v61  ;;  %828 = vmatpush.bf16.msrb.mxu3 %v358_v61 }
  0xe4   :  { %v222_v52 = vpop.f32.mrf.mxu0 }
  0xe5   :  { %258 = vst [vmem:[#allocation3 + $0x18] sm:$0xff] %v222_v52  ;;  %v1131_v53 = vpack.c.bf16 %v222_v52, %v220_v51  ;;  %v319_v52 = vld [vmem:[#allocation4 + $0xc] sm:$0x1] }
  0xec   :  { %v225_v54 = vpop.f32.mrf.mxu0 }
  0xed   :  { %259 = vst [vmem:[#allocation3 + $0x20] sm:$0xff] %v225_v54 }
  0xf4   :  { %v227_v55 = vpop.f32.mrf.mxu0 }
  0xf5   :  { %260 = vst [vmem:[#allocation3 + $0x28] sm:$0xff] %v227_v55  ;;  %v1133_v56 = vpack.c.bf16 %v227_v55, %v225_v54 }
  0xfc   :  { %v230_v57 = vpop.f32.mrf.mxu0 }
  0xfd   :  { %261 = vst [vmem:[#allocation3 + $0x30] sm:$0xff] %v230_v57 }
 0x104   :  { %v232_v59 = vpop.f32.mrf.mxu0 }
 0x105   :  { %262 = vst [vmem:[#allocation3 + $0x38] sm:$0xff] %v232_v59  ;;  %v354_v26 = vpack.c.bf16 %v232_v59, %v230_v57  ;;  %v323_v57 = vld [vmem:[#allocation4 + $0xd] sm:$0x1] }
 0x10c   :  { %v235_v62 = vpop.f32.mrf.mxu0 }
 0x10d   :  { %263 = vst [vmem:[#allocation3 + $0x40] sm:$0xff] %v235_v62 }
 0x114   :  { %v237_v63 = vpop.f32.mrf.mxu0 }
 0x115   :  { %264 = vst [vmem:[#allocation3 + $0x48] sm:$0xff] %v237_v63  ;;  %v355_v13 = vpack.c.bf16 %v237_v63, %v235_v62  ;;  %v331_v63 = vld [vmem:[#allocation4 + $0xf] sm:$0x1] }
 0x11c   :  { %v240_v0 = vpop.f32.mrf.mxu0 }
 0x11d   :  { %265 = vst [vmem:[#allocation3 + $0x50] sm:$0xff] %v240_v0 }
 0x124   :  { %v242_v1 = vpop.f32.mrf.mxu0 }
 0x125   :  { %266 = vst [vmem:[#allocation3 + $0x58] sm:$0xff] %v242_v1  ;;  %v356_v5 = vpack.c.bf16 %v242_v1, %v240_v0 }
 0x12c   :  { %v245_v2 = vpop.f32.mrf.mxu0 }
 0x12d   :  { %267 = vst [vmem:[#allocation3 + $0x60] sm:$0xff] %v245_v2 }
 0x134   :  { %v247_v3 = vpop.f32.mrf.mxu0 }
 0x135   :  { %268 = vst [vmem:[#allocation3 + $0x68] sm:$0xff] %v247_v3  ;;  %v357_v4 = vpack.c.bf16 %v247_v3, %v245_v2 }
 0x137   :  { %360 = vmatpush.bf16.msra.mxu1 %v357_v4  ;;  %829 = vmatpush.bf16.msrb.mxu3 %v357_v4 }
 0x13b   :  { %361 = vmatpush.bf16.msra.mxu1 %v356_v5  ;;  %830 = vmatpush.bf16.msrb.mxu3 %v356_v5 }
 0x13c   :  { %v272_v9 = vld [vmem:[%s1042_s2] sm:$0x1] }
 0x13d   :  { %v276_v10 = vld [vmem:[%s1046_s17] sm:$0x1]  ;;  %v273_v14 = vadd.f32 %v272_v9, %v271_v6 }
 0x13e   :  { %v280_v11 = vld [vmem:[%s1050_s18] sm:$0x1]  ;;  %v277_v17 = vadd.f32 %v276_v10, %v275_v7 }
 0x13f   :  { %v284_v12 = vld [vmem:[%s1054_s24] sm:$0x1]  ;;  %362 = vmatpush.bf16.msra.mxu1 %v355_v13  ;;  %831 = vmatpush.bf16.msrb.mxu3 %v355_v13  ;;  %v281_v20 = vadd.f32 %v280_v11, %v279_v8  ;;  %274 = vst [vmem:[#allocation4] sm:$0x1] %v273_v14 }
 0x140   :  { %v288_v16 = vld [vmem:[%s1058_s19] sm:$0x1]  ;;  %v285_v23 = vadd.f32 %v284_v12, %v283_v15  ;;  %278 = vst [vmem:[#allocation4 + $0x1] sm:$0x1] %v277_v17 }
 0x141   :  { %v292_v19 = vld [vmem:[%s1062_s20] sm:$0x1]  ;;  %v289_v27 = vadd.f32 %v288_v16, %v287_v18  ;;  %282 = vst [vmem:[#allocation4 + $0x2] sm:$0x1] %v281_v20 }
 0x142   :  { %v296_v22 = vld [vmem:[%s1066_s21] sm:$0x1]  ;;  %v293_v30 = vadd.f32 %v292_v19, %v291_v21  ;;  %286 = vst [vmem:[#allocation4 + $0x3] sm:$0x1] %v285_v23 }
 0x143   :  { %v300_v25 = vld [vmem:[%s1070_s22] sm:$0x1]  ;;  %363 = vmatpush.bf16.msra.mxu1 %v354_v26  ;;  %832 = vmatpush.bf16.msrb.mxu3 %v354_v26  ;;  %v297_v33 = vadd.f32 %v296_v22, %v295_v24  ;;  %290 = vst [vmem:[#allocation4 + $0x4] sm:$0x1] %v289_v27 }
 0x144   :  { %v304_v29 = vld [vmem:[%s1074_s23] sm:$0x1]  ;;  %v301_v36 = vadd.f32 %v300_v25, %v299_v28  ;;  %294 = vst [vmem:[#allocation4 + $0x5] sm:$0x1] %v293_v30 }
 0x145   :  { %v308_v32 = vld [vmem:[%s1078_s25] sm:$0x1]  ;;  %v305_v39 = vadd.f32 %v304_v29, %v303_v31  ;;  %298 = vst [vmem:[#allocation4 + $0x6] sm:$0x1] %v297_v33 }
 0x146   :  { %v312_v35 = vld [vmem:[%s1082_s0] sm:$0x1]  ;;  %v309_v51 = vadd.f32 %v308_v32, %v307_v34  ;;  %302 = vst [vmem:[#allocation4 + $0x7] sm:$0x1] %v301_v36 }
 0x147   :  { %v316_v38 = vld [vmem:[%s1086_s26] sm:$0x1]  ;;  %364 = vmatpush.bf16.msra.mxu1 %v1133_v56  ;;  %833 = vmatpush.bf16.msrb.mxu3 %v1133_v56  ;;  %v313_v55 = vadd.f32 %v312_v35, %v311_v37  ;;  %306 = vst [vmem:[#allocation4 + $0x8] sm:$0x1] %v305_v39  ;;  %v428_v29 = vld [vmem:[#allocation4 + $0x1] sm:$0x1] }
 0x148   :  { %v320_v49 = vld [vmem:[%s1090_s27] sm:$0x1]  ;;  %v317_v59 = vadd.f32 %v316_v38, %v315_v48  ;;  %310 = vst [vmem:[#allocation4 + $0x9] sm:$0x1] %v309_v51  ;;  %v432_v32 = vld [vmem:[#allocation4 + $0x2] sm:$0x1] }
 0x149   :  { %v324_v54 = vld [vmem:[%s1094_s28] sm:$0x1]  ;;  %v321_v62 = vadd.f32 %v320_v49, %v319_v52  ;;  %314 = vst [vmem:[#allocation4 + $0xa] sm:$0x1] %v313_v55  ;;  %v436_v35 = vld [vmem:[#allocation4 + $0x3] sm:$0x1] }
 0x14a   :  { %v328_v58 = vld [vmem:[%s1098_s29] sm:$0x1]  ;;  %v325_v0 = vadd.f32 %v324_v54, %v323_v57  ;;  %318 = vst [vmem:[#allocation4 + $0xb] sm:$0x1] %v317_v59  ;;  %v440_v38 = vld [vmem:[#allocation4 + $0x4] sm:$0x1] }
 0x14b   :  { %v332_v61 = vld [vmem:[%s1102_s30] sm:$0x1]  ;;  %365 = vmatpush.bf16.msra.mxu1 %v1131_v53  ;;  %834 = vmatpush.bf16.msrb.mxu3 %v1131_v53  ;;  %v329_v1 = vadd.f32 %v328_v58, %v327_v60  ;;  %322 = vst [vmem:[#allocation4 + $0xc] sm:$0x1] %v321_v62  ;;  %v444_v51 = vld [vmem:[#allocation4 + $0x5] sm:$0x1] }
 0x14c   :  { %v333_v56 = vadd.f32 %v332_v61, %v331_v63  ;;  %326 = vst [vmem:[#allocation4 + $0xd] sm:$0x1] %v325_v0  ;;  %v424_v22 = vld [vmem:[#allocation4] sm:$0x1]  ;;  %v448_v55 = vld [vmem:[#allocation4 + $0x6] sm:$0x1] }
 0x14d   :  { %330 = vst [vmem:[#allocation4 + $0xe] sm:$0x1] %v329_v1  ;;  %v452_v59 = vld [vmem:[#allocation4 + $0x7] sm:$0x1] }
 0x14e   :  { %334 = vst [vmem:[#allocation4 + $0xf] sm:$0x1] %v333_v56  ;;  %v456_v62 = vld [vmem:[#allocation4 + $0x8] sm:$0x1] }
 0x14f   :  { %366 = vmatpush.bf16.msra.mxu1 %v1129_v50  ;;  %835 = vmatpush.bf16.msrb.mxu3 %v1129_v50  ;;  %v460_v1 = vld [vmem:[#allocation4 + $0x9] sm:$0x1] }
 0x152   :  { %367 = vmatmul.bf16.vlgmr.msra.gmra.mxu1 %v1105_v40  ;;  %402 = vmatmul.bf16.vlgmr.msrb.gmra.mxu3 %v1114_v43 }
 0x162   :  { %372 = vmatmul.bf16.gmra.mxu1 %v1108_v41 }
 0x172   :  { %377 = vmatmul.bf16.gmra.mxu1 %v1111_v42 }
 0x182   :  { %382 = vmatmul.bf16.gmra.mxu1 %v1117_v44 }
 0x192   :  { %387 = vmatmul.bf16.gmra.mxu1 %v1120_v45 }
 0x1a2   :  { %392 = vmatmul.bf16.gmra.mxu1 %v1123_v46 }
 0x1b2   :  { %397 = vmatmul.bf16.gmra.mxu1 %v1126_v47 }
 0x1cf   :  { %v368_v53 = vpop.f32.mrf.mxu1 }
 0x1d0   :  { %408 = vst [vmem:[#allocation3] sm:$0xff] %v368_v53 }
 0x1d5   :  { %v403_v10 = vpop.f32.mrf.mxu3 }
 0x1d6   :  { %422 = vst [vmem:[#allocation3 + $0x70] sm:$0xff] %v403_v10 }
 0x1d7   :  { %v370_v50 = vpop.f32.mrf.mxu1 }
 0x1d8   :  { %409 = vst [vmem:[#allocation3 + $0x8] sm:$0xff] %v370_v50  ;;  %v1165_v2 = vpack.c.bf16 %v370_v50, %v368_v53  ;;  %v464_v50 = vld [vmem:[#allocation4 + $0xa] sm:$0x1] }
 0x1dd   :  { %v405_v12 = vpop.f32.mrf.mxu3 }
 0x1de   :  { %423 = vst [vmem:[#allocation3 + $0x78] sm:$0xff] %v405_v12  ;;  %v511_v14 = vpack.c.bf16 %v405_v12, %v403_v10  ;;  %v472_v10 = vld [vmem:[#allocation4 + $0xc] sm:$0x1] }
 0x1df   :  { %v373_v3 = vpop.f32.mrf.mxu1 }
 0x1e0   :  { %410 = vst [vmem:[#allocation3 + $0x10] sm:$0xff] %v373_v3  ;;  %512 = vmatpush.bf16.msra.mxu2 %v511_v14  ;;  %836 = vmatpush.bf16.msra.mxu3 %v511_v14 }
 0x1e7   :  { %v375_v4 = vpop.f32.mrf.mxu1 }
 0x1e8   :  { %411 = vst [vmem:[#allocation3 + $0x18] sm:$0xff] %v375_v4  ;;  %v1167_v5 = vpack.c.bf16 %v375_v4, %v373_v3 }
 0x1ef   :  { %v378_v6 = vpop.f32.mrf.mxu1 }
 0x1f0   :  { %412 = vst [vmem:[#allocation3 + $0x20] sm:$0xff] %v378_v6 }
 0x1f7   :  { %v380_v7 = vpop.f32.mrf.mxu1 }
 0x1f8   :  { %413 = vst [vmem:[#allocation3 + $0x28] sm:$0xff] %v380_v7  ;;  %v1169_v8 = vpack.c.bf16 %v380_v7, %v378_v6  ;;  %v468_v6 = vld [vmem:[#allocation4 + $0xb] sm:$0x1] }
 0x1ff   :  { %v383_v9 = vpop.f32.mrf.mxu1 }
 0x200   :  { %414 = vst [vmem:[#allocation3 + $0x30] sm:$0xff] %v383_v9 }
 0x207   :  { %v385_v11 = vpop.f32.mrf.mxu1 }
 0x208   :  { %415 = vst [vmem:[#allocation3 + $0x38] sm:$0xff] %v385_v11  ;;  %v507_v39 = vpack.c.bf16 %v385_v11, %v383_v9 }
 0x20f   :  { %v388_v13 = vpop.f32.mrf.mxu1 }
 0x210   :  { %416 = vst [vmem:[#allocation3 + $0x40] sm:$0xff] %v388_v13 }
 0x217   :  { %v390_v15 = vpop.f32.mrf.mxu1 }
 0x218   :  { %417 = vst [vmem:[#allocation3 + $0x48] sm:$0xff] %v390_v15  ;;  %v508_v26 = vpack.c.bf16 %v390_v15, %v388_v13  ;;  %v476_v13 = vld [vmem:[#allocation4 + $0xd] sm:$0x1]  ;;  %v480_v15 = vld [vmem:[#allocation4 + $0xe] sm:$0x1] }
 0x21f   :  { %v393_v16 = vpop.f32.mrf.mxu1 }
 0x220   :  { %418 = vst [vmem:[#allocation3 + $0x50] sm:$0xff] %v393_v16 }
 0x227   :  { %v395_v17 = vpop.f32.mrf.mxu1 }
 0x228   :  { %419 = vst [vmem:[#allocation3 + $0x58] sm:$0xff] %v395_v17  ;;  %v509_v21 = vpack.c.bf16 %v395_v17, %v393_v16  ;;  %v484_v16 = vld [vmem:[#allocation4 + $0xf] sm:$0x1] }
 0x22f   :  { %v398_v18 = vpop.f32.mrf.mxu1 }
 0x230   :  { %420 = vst [vmem:[#allocation3 + $0x60] sm:$0xff] %v398_v18 }
 0x237   :  { %v400_v19 = vpop.f32.mrf.mxu1 }
 0x238   :  { %421 = vst [vmem:[#allocation3 + $0x68] sm:$0xff] %v400_v19  ;;  %v510_v20 = vpack.c.bf16 %v400_v19, %v398_v18 }
 0x23a   :  { %513 = vmatpush.bf16.msra.mxu2 %v510_v20  ;;  %837 = vmatpush.bf16.msra.mxu3 %v510_v20 }
 0x23e   :  { %514 = vmatpush.bf16.msra.mxu2 %v509_v21  ;;  %838 = vmatpush.bf16.msra.mxu3 %v509_v21 }
 0x23f   :  { %v425_v23 = vld [vmem:[%s1042_s2] sm:$0x1] }
 0x240   :  { %v429_v24 = vld [vmem:[%s1046_s17] sm:$0x1]  ;;  %v426_v28 = vadd.f32 %v425_v23, %v424_v22 }
 0x241   :  { %v433_v25 = vld [vmem:[%s1050_s18] sm:$0x1]  ;;  %v430_v31 = vadd.f32 %v429_v24, %v428_v29 }
 0x242   :  { %v437_v27 = vld [vmem:[%s1054_s24] sm:$0x1]  ;;  %515 = vmatpush.bf16.msra.mxu2 %v508_v26  ;;  %839 = vmatpush.bf16.msra.mxu3 %v508_v26  ;;  %v434_v34 = vadd.f32 %v433_v25, %v432_v32  ;;  %427 = vst [vmem:[#allocation4] sm:$0x1] %v426_v28 }
 0x243   :  { %v441_v30 = vld [vmem:[%s1058_s19] sm:$0x1]  ;;  %v438_v37 = vadd.f32 %v437_v27, %v436_v35  ;;  %431 = vst [vmem:[#allocation4 + $0x1] sm:$0x1] %v430_v31 }
 0x244   :  { %v445_v33 = vld [vmem:[%s1062_s20] sm:$0x1]  ;;  %v442_v49 = vadd.f32 %v441_v30, %v440_v38  ;;  %435 = vst [vmem:[#allocation4 + $0x2] sm:$0x1] %v434_v34 }
 0x245   :  { %v449_v36 = vld [vmem:[%s1066_s21] sm:$0x1]  ;;  %v446_v54 = vadd.f32 %v445_v33, %v444_v51  ;;  %439 = vst [vmem:[#allocation4 + $0x3] sm:$0x1] %v438_v37 }
 0x246   :  { %v453_v48 = vld [vmem:[%s1070_s22] sm:$0x1]  ;;  %516 = vmatpush.bf16.msra.mxu2 %v507_v39  ;;  %840 = vmatpush.bf16.msra.mxu3 %v507_v39  ;;  %v450_v58 = vadd.f32 %v449_v36, %v448_v55  ;;  %443 = vst [vmem:[#allocation4 + $0x4] sm:$0x1] %v442_v49 }
 0x247   :  { %v457_v52 = vld [vmem:[%s1074_s23] sm:$0x1]  ;;  %v454_v61 = vadd.f32 %v453_v48, %v452_v59  ;;  %447 = vst [vmem:[#allocation4 + $0x5] sm:$0x1] %v446_v54 }
 0x248   :  { %v461_v57 = vld [vmem:[%s1078_s25] sm:$0x1]  ;;  %v458_v0 = vadd.f32 %v457_v52, %v456_v62  ;;  %451 = vst [vmem:[#allocation4 + $0x6] sm:$0x1] %v450_v58 }
 0x249   :  { %v465_v60 = vld [vmem:[%s1082_s0] sm:$0x1]  ;;  %v462_v53 = vadd.f32 %v461_v57, %v460_v1  ;;  %455 = vst [vmem:[#allocation4 + $0x7] sm:$0x1] %v454_v61 }
 0x24a   :  { %v469_v63 = vld [vmem:[%s1086_s26] sm:$0x1]  ;;  %517 = vmatpush.bf16.msra.mxu2 %v1169_v8  ;;  %841 = vmatpush.bf16.msra.mxu3 %v1169_v8  ;;  %v466_v4 = vadd.f32 %v465_v60, %v464_v50  ;;  %459 = vst [vmem:[#allocation4 + $0x8] sm:$0x1] %v458_v0  ;;  %v581_v25 = vld [vmem:[#allocation4 + $0x1] sm:$0x1] }
 0x24b   :  { %v473_v56 = vld [vmem:[%s1090_s27] sm:$0x1]  ;;  %v470_v9 = vadd.f32 %v469_v63, %v468_v6  ;;  %463 = vst [vmem:[#allocation4 + $0x9] sm:$0x1] %v462_v53  ;;  %v585_v26 = vld [vmem:[#allocation4 + $0x2] sm:$0x1] }
 0x24c   :  { %v477_v3 = vld [vmem:[%s1094_s28] sm:$0x1]  ;;  %v474_v12 = vadd.f32 %v473_v56, %v472_v10  ;;  %467 = vst [vmem:[#allocation4 + $0xa] sm:$0x1] %v466_v4  ;;  %v589_v27 = vld [vmem:[#allocation4 + $0x3] sm:$0x1] }
 0x24d   :  { %v481_v7 = vld [vmem:[%s1098_s29] sm:$0x1]  ;;  %v478_v14 = vadd.f32 %v477_v3, %v476_v13  ;;  %471 = vst [vmem:[#allocation4 + $0xb] sm:$0x1] %v470_v9  ;;  %v593_v38 = vld [vmem:[#allocation4 + $0x4] sm:$0x1] }
 0x24e   :  { %v485_v11 = vld [vmem:[%s1102_s30] sm:$0x1]  ;;  %518 = vmatpush.bf16.msra.mxu2 %v1167_v5  ;;  %842 = vmatpush.bf16.msra.mxu3 %v1167_v5  ;;  %v482_v8 = vadd.f32 %v481_v7, %v480_v15  ;;  %475 = vst [vmem:[#allocation4 + $0xc] sm:$0x1] %v474_v12  ;;  %v597_v49 = vld [vmem:[#allocation4 + $0x5] sm:$0x1] }
 0x24f   :  { %v486_v17 = vadd.f32 %v485_v11, %v484_v16  ;;  %479 = vst [vmem:[#allocation4 + $0xd] sm:$0x1] %v478_v14  ;;  %v577_v24 = vld [vmem:[#allocation4] sm:$0x1]  ;;  %v601_v54 = vld [vmem:[#allocation4 + $0x6] sm:$0x1] }
 0x250   :  { %483 = vst [vmem:[#allocation4 + $0xe] sm:$0x1] %v482_v8  ;;  %v605_v58 = vld [vmem:[#allocation4 + $0x7] sm:$0x1] }
 0x251   :  { %487 = vst [vmem:[#allocation4 + $0xf] sm:$0x1] %v486_v17  ;;  %v609_v61 = vld [vmem:[#allocation4 + $0x8] sm:$0x1] }
 0x252   :  { %519 = vmatpush.bf16.msra.mxu2 %v1165_v2  ;;  %843 = vmatpush.bf16.msra.mxu3 %v1165_v2  ;;  %v613_v0 = vld [vmem:[#allocation4 + $0x9] sm:$0x1] }
 0x253   :  { %v617_v53 = vld [vmem:[#allocation4 + $0xa] sm:$0x1] }
 0x254   :  { %v621_v4 = vld [vmem:[#allocation4 + $0xb] sm:$0x1] }
 0x255   :  { %520 = vmatmul.bf16.vlgmr.msra.gmra.mxu2 %v1105_v40  ;;  %555 = vmatmul.bf16.vlgmr.msra.gmra.mxu3 %v1114_v43  ;;  %v625_v9 = vld [vmem:[#allocation4 + $0xc] sm:$0x1] }
 0x256   :  { %v629_v12 = vld [vmem:[#allocation4 + $0xd] sm:$0x1] }
 0x257   :  { %v633_v15 = vld [vmem:[#allocation4 + $0xe] sm:$0x1] }
 0x258   :  { %v637_v16 = vld [vmem:[#allocation4 + $0xf] sm:$0x1] }
 0x265   :  { %525 = vmatmul.bf16.gmra.mxu2 %v1108_v41 }
 0x275   :  { %530 = vmatmul.bf16.gmra.mxu2 %v1111_v42 }
 0x285   :  { %535 = vmatmul.bf16.gmra.mxu2 %v1117_v44 }
 0x295   :  { %540 = vmatmul.bf16.gmra.mxu2 %v1120_v45 }
 0x2a5   :  { %545 = vmatmul.bf16.gmra.mxu2 %v1123_v46 }
 0x2b5   :  { %550 = vmatmul.bf16.gmra.mxu2 %v1126_v47 }
 0x2d8   :  { %v521_v5 = vpop.f32.mrf.mxu2  ;;  %v556_v45 = vpop.f32.mrf.mxu3 }
 0x2d9   :  { %561 = vst [vmem:[#allocation3] sm:$0xff] %v521_v5 }
 0x2da   :  { %575 = vst [vmem:[#allocation3 + $0x70] sm:$0xff] %v556_v45 }
 0x2e0   :  { %v523_v2 = vpop.f32.mrf.mxu2  ;;  %v558_v47 = vpop.f32.mrf.mxu3 }
 0x2e1   :  { %562 = vst [vmem:[#allocation3 + $0x8] sm:$0xff] %v523_v2 }
 0x2e2   :  { %576 = vst [vmem:[#allocation3 + $0x78] sm:$0xff] %v558_v47 }
 0x2e8   :  { %v526_v18 = vpop.f32.mrf.mxu2 }
 0x2e9   :  { %563 = vst [vmem:[#allocation3 + $0x10] sm:$0xff] %v526_v18 }
 0x2f0   :  { %v528_v40 = vpop.f32.mrf.mxu2 }
 0x2f1   :  { %564 = vst [vmem:[#allocation3 + $0x18] sm:$0xff] %v528_v40 }
 0x2f8   :  { %v531_v43 = vpop.f32.mrf.mxu2 }
 0x2f9   :  { %565 = vst [vmem:[#allocation3 + $0x20] sm:$0xff] %v531_v43 }
 0x300   :  { %v533_v41 = vpop.f32.mrf.mxu2 }
 0x301   :  { %566 = vst [vmem:[#allocation3 + $0x28] sm:$0xff] %v533_v41  ;;  %v975_v41 = vmov 1.0  }
 0x308   :  { %v536_v42 = vpop.f32.mrf.mxu2 }
 0x309   :  { %567 = vst [vmem:[#allocation3 + $0x30] sm:$0xff] %v536_v42 }
 0x310   :  { %v538_v44 = vpop.f32.mrf.mxu2 }
 0x311   :  { %568 = vst [vmem:[#allocation3 + $0x38] sm:$0xff] %v538_v44 }
 0x318   :  { %v541_v46 = vpop.f32.mrf.mxu2 }
 0x319   :  { %569 = vst [vmem:[#allocation3 + $0x40] sm:$0xff] %v541_v46 }
 0x320   :  { %v543_v19 = vpop.f32.mrf.mxu2 }
 0x321   :  { %570 = vst [vmem:[#allocation3 + $0x48] sm:$0xff] %v543_v19 }
 0x328   :  { %v546_v20 = vpop.f32.mrf.mxu2 }
 0x329   :  { %571 = vst [vmem:[#allocation3 + $0x50] sm:$0xff] %v546_v20 }
 0x330   :  { %v548_v21 = vpop.f32.mrf.mxu2 }
 0x331   :  { %572 = vst [vmem:[#allocation3 + $0x58] sm:$0xff] %v548_v21 }
 0x338   :  { %v551_v22 = vpop.f32.mrf.mxu2 }
 0x339   :  { %573 = vst [vmem:[#allocation3 + $0x60] sm:$0xff] %v551_v22 }
 0x340   :  { %v553_v23 = vpop.f32.mrf.mxu2 }
 0x341   :  { %574 = vst [vmem:[#allocation3 + $0x68] sm:$0xff] %v553_v23 }
 0x348   :  { %v578_v28 = vld [vmem:[%s1042_s2] sm:$0x1] }
 0x349   :  { %v582_v29 = vld [vmem:[%s1046_s17] sm:$0x1]  ;;  %v579_v31 = vadd.f32 %v578_v28, %v577_v24 }
 0x34a   :  { %v586_v30 = vld [vmem:[%s1050_s18] sm:$0x1]  ;;  %v583_v32 = vadd.f32 %v582_v29, %v581_v25 }
 0x34b   :  { %v587_v33 = vadd.f32 %v586_v30, %v585_v26  ;;  %v590_v34 = vld [vmem:[%s1054_s24] sm:$0x1]  ;;  %580 = vst [vmem:[#allocation4] sm:$0x1] %v579_v31 }
 0x34c   :  { %v594_v35 = vld [vmem:[%s1058_s19] sm:$0x1]  ;;  %v591_v37 = vadd.f32 %v590_v34, %v589_v27  ;;  %584 = vst [vmem:[#allocation4 + $0x1] sm:$0x1] %v583_v32 }
 0x34d   :  { %v598_v36 = vld [vmem:[%s1062_s20] sm:$0x1]  ;;  %v595_v48 = vadd.f32 %v594_v35, %v593_v38  ;;  %588 = vst [vmem:[#allocation4 + $0x2] sm:$0x1] %v587_v33 }
 0x34e   :  { %v602_v39 = vld [vmem:[%s1066_s21] sm:$0x1]  ;;  %v599_v52 = vadd.f32 %v598_v36, %v597_v49  ;;  %592 = vst [vmem:[#allocation4 + $0x3] sm:$0x1] %v591_v37 }
 0x34f   :  { %v606_v51 = vld [vmem:[%s1070_s22] sm:$0x1]  ;;  %v603_v57 = vadd.f32 %v602_v39, %v601_v54  ;;  %596 = vst [vmem:[#allocation4 + $0x4] sm:$0x1] %v595_v48 }
 0x350   :  { %v610_v55 = vld [vmem:[%s1074_s23] sm:$0x1]  ;;  %v607_v60 = vadd.f32 %v606_v51, %v605_v58  ;;  %600 = vst [vmem:[#allocation4 + $0x5] sm:$0x1] %v599_v52 }
 0x351   :  { %v614_v59 = vld [vmem:[%s1078_s25] sm:$0x1]  ;;  %v611_v63 = vadd.f32 %v610_v55, %v609_v61  ;;  %604 = vst [vmem:[#allocation4 + $0x6] sm:$0x1] %v603_v57 }
 0x352   :  { %v618_v62 = vld [vmem:[%s1082_s0] sm:$0x1]  ;;  %v615_v56 = vadd.f32 %v614_v59, %v613_v0  ;;  %608 = vst [vmem:[#allocation4 + $0x7] sm:$0x1] %v607_v60 }
 0x353   :  { %v622_v1 = vld [vmem:[%s1086_s26] sm:$0x1]  ;;  %v619_v3 = vadd.f32 %v618_v62, %v617_v53  ;;  %612 = vst [vmem:[#allocation4 + $0x8] sm:$0x1] %v611_v63 }
 0x354   :  { %v626_v50 = vld [vmem:[%s1090_s27] sm:$0x1]  ;;  %v623_v7 = vadd.f32 %v622_v1, %v621_v4  ;;  %616 = vst [vmem:[#allocation4 + $0x9] sm:$0x1] %v615_v56 }
 0x355   :  { %v630_v6 = vld [vmem:[%s1094_s28] sm:$0x1]  ;;  %v627_v11 = vadd.f32 %v626_v50, %v625_v9  ;;  %620 = vst [vmem:[#allocation4 + $0xa] sm:$0x1] %v619_v3 }
 0x356   :  { %v634_v10 = vld [vmem:[%s1098_s29] sm:$0x1]  ;;  %v631_v14 = vadd.f32 %v630_v6, %v629_v12  ;;  %624 = vst [vmem:[#allocation4 + $0xb] sm:$0x1] %v623_v7 }
 0x357   :  { %v638_v13 = vld [vmem:[%s1102_s30] sm:$0x1]  ;;  %v635_v8 = vadd.f32 %v634_v10, %v633_v15  ;;  %628 = vst [vmem:[#allocation4 + $0xc] sm:$0x1] %v627_v11 }
 0x358   :  { %v639_v17 = vadd.f32 %v638_v13, %v637_v16  ;;  %632 = vst [vmem:[#allocation4 + $0xd] sm:$0x1] %v631_v14 }
 0x359   :  { %636 = vst [vmem:[#allocation4 + $0xe] sm:$0x1] %v635_v8  ;;  %v641_v5 = vld [vmem:[#allocation4] sm:$0xff] }
 0x35a   :  { %640 = vst [vmem:[#allocation4 + $0xf] sm:$0x1] %v639_v17  ;;  %v685_v2 = vmul.f32 %v641_v5, %v641_v5 }
 0x35c   :  { %687 = vadd.xlane.f32.xlu0 %v685_v2 }
 0x361   :  { %v642_v18 = vld [vmem:[#allocation4 + $0x8] sm:$0xff] }
 0x362   :  { %v643_v40 = vmul.f32 %v642_v18, %v641_v5  ;;  %v686_v43 = vmul.f32 %v642_v18, %v642_v18 }
 0x364   :  { %659 = vmatpush.xpose.msrb.mxu3 %v643_v40  ;;  %689 = vadd.xlane.f32.xlu0 %v686_v43 }
 0x367   :  { %660 = vmatmul.f32.vlgmr.msrb.gmra.mxu3 %v975_v41 }
 0x3cf   :  { %v688_v42 = vpop.xlane.xlu0 %687 }
 0x3d7   :  { %v690_v44 = vpop.xlane.xlu0 %689 }
 0x3d8   :  { %v691_v45 = vadd.f32 %v690_v44, %v688_v42 }
 0x3da   :  { %v692_v46 = vrot.slane %v691_v45, 4 }
 0x3dc   :  { %v693_v47 = vadd.f32 %v692_v46, %v691_v45 }
 0x3de   :  { %v694_v19 = vrot.slane %v693_v47, 2 }
 0x3e0   :  { %v695_v20 = vadd.f32 %v694_v19, %v693_v47 }
 0x3e2   :  { %v696_v21 = vrot.slane %v695_v20, 1 }
 0x3e4   :  { %v697_v22 = vadd.f32 %v696_v21, %v695_v20 }
 0x3e6   :  { %v698_v23 = vmul.f32 0.000125, %v697_v22 }
 0x3e8   :  { %700 = vst.msk [vmem:[#allocation10] sm:$0x1] %vm699_vm0, %v698_v23 }
 0x3e9   :  { %722 = dma.vmem_to_hbm [thread:$0]  %s718_s6, 16, %s720_s9, [#allocation11]  }
 0x3ea   :  { %v661_v24 = vpop.f32.mrf.mxu3 }
 0x3eb   :  { %v809_v25 = vmul.f32 -1.442695, %v661_v24 }
 0x3ed   :  { %850 = vpow2.f32 %v809_v25 }
 0x3f3   :  { %v851_v26 = vpop.eup %850 }
 0x3f4   :  { %v667_v27 = vadd.f32 1.0, %v851_v26 }
 0x3f6   :  { %852 = vrcp.f32 %v667_v27  ;;  %v679_v31 = vand.u32 2147483648, %v667_v27  ;;  %v677_v33 = vand.u32 2147483647, %v667_v27  ;;  %vm673_vm2 = vweird.f32 %v667_v27 }
 0x3f8   :  { %v680_v35 = vor.u32 1.1754944e-38, %v679_v31  ;;  %vm678_vm5 = vcmp.eq.f32.partialorder %v677_v33, 8.507059e+37 }
 0x3fc   :  { %v853_v28 = vpop.eup %852 }
 0x3fd   :  { %v669_v29 = vmul.f32 %v853_v28, %v667_v27  ;;  %vm674_vm1 = vweird.f32 %v853_v28 }
 0x3fe   :  { %vm675_vm3 = vmor %vm673_vm2, %vm674_vm1 }
 0x3ff   :  { %v670_v30 = vsub.f32 1.0, %v669_v29 }
 0x401   :  { %v671_v32 = vmul.f32 %v853_v28, %v670_v30 }
 0x403   :  { %v672_v34 = vadd.f32 %v853_v28, %v671_v32 }
 0x405   :  { %v676_v36 = vsel %vm675_vm3, %v853_v28, %v672_v34 }
 0x406   :  { %v681_v37 = vsel %vm678_vm5, %v680_v35, %v676_v36 }
 0x407   :  { %684 = vst.msk [vmem:[#allocation8] sm:$0x1] %vm683_vm4, %v681_v37 }
 0x408   :  { %711 = dma.vmem_to_hbm [thread:$0]  %s707_s10, 16, %s709_s12, [#allocation9]  }
 0x409   :  { %968 = dma.done.wait [#allocation9], 16  }
 0x40a   :  { %969 = vsyncadd [#allocation9], 4294967280 }
 0x40b   :  { %970 = dma.done.wait [#allocation11], 16  }
 0x40c   :  { %971 = vsyncadd [#allocation11], 4294967280 }
 0x40d   :  { %731 = vsyncpa [#allocation9], 1 }
 0x40e   :  { %732 = vsyncpa [#allocation11], 1 }
 0x40f   :  { %733 = vsyncmov [#allocation5] }
 0x412   :  { %s734_s3 = vpop.sfrf %733 }
 0x413   :  { %p810_p0 = scmp.ne.s32.totalorder %s734_s3, 0 }
 0x415   :  { %738 = shalt.err (%p810_p0)  }
 0x416   :  { %740 = vsyncmov [#allocation5 + $0x1] }
 0x419   :  { %s741_s13 = vpop.sfrf %740 }
 0x41a   :  { %p811_p1 = scmp.ne.s32.totalorder %s741_s13, 0 }
 0x41c   :  { %745 = shalt.err (%p811_p1)  }

</bundles_post_ra>
